<compile_context>
chip_gen: v7x
topology: tpu7x:2x2x1
jax: 0.10.0
libtpu: 0.0.40
codegen_flags: <defaults>
</compile_context>

<pallas_src>
import functools

import jax
import jax.numpy as jnp
from jax.experimental import pallas as pl
from jax.experimental.pallas import tpu as pltpu


def clam_mb_time_kernel(h_ref, wfc_ref, bfc_ref, wab_ref, bab_ref,
                        wc_ref, bc_ref, wclst_ref, bcls_ref, logits_ref, *, D):
    # ---- attention_net: Linear(L, H) + ReLU (bf16 inputs, f32 accumulation) ----
    h1 = jnp.dot(h_ref[...], wfc_ref[...],
                 preferred_element_type=jnp.float32) + bfc_ref[...]     # (N, H) f32
    h1 = jnp.maximum(h1, 0.0)
    h1_bf = h1.astype(jnp.bfloat16)          # reused by the gated-attn and Wcls matmuls

    # ---- Attn_Net_Gated: Wa/Wb fused into one (H, 2D) matmul ----
    xab = jnp.dot(h1_bf, wab_ref[...],
                  preferred_element_type=jnp.float32) + bab_ref[...]    # (N, 2D) f32
    a = jnp.tanh(xab[:, :D])                                            # (N, D) f32
    b = jax.nn.sigmoid(xab[:, D:])                                      # (N, D) f32
    A = jnp.dot((a * b).astype(jnp.bfloat16), wc_ref[...],
                preferred_element_type=jnp.float32) + bc_ref[...]       # (N, C) f32

    # ---- per-class bag projections P[n, c] = h1[n] . Wcls[c] ----
    P = jnp.dot(h1_bf, wclst_ref[...],
                preferred_element_type=jnp.float32)                     # (N, C) f32

    # ---- softmax over instances fused with the bag contraction ----
    # logits[0, c] = (sum_n eA[n,c] * P[n,c]) / (sum_n eA[n,c]) + bcls[c]
    eA = jnp.exp(A - jnp.max(A, axis=0, keepdims=True))                 # (N, C) f32
    num = jnp.sum(eA * P, axis=0, keepdims=True)                        # (1, C)
    den = jnp.sum(eA, axis=0, keepdims=True)                            # (1, C)
    logits_ref[...] = num * pl.reciprocal(den, approx=True) + bcls_ref[...]


def clam_mb_time_forward(h, params):
    """Returns logits of shape (1, n_classes), matching the PyTorch forward."""
    N, L = h.shape
    H = params["wfc"].shape[1]
    D = params["wa"].shape[1]
    C = params["wc"].shape[1]

    bf16, f32 = jnp.bfloat16, jnp.float32
    # Matmul operands in bf16 (halves HBM->VMEM bytes); biases stay f32 (tiny, added
    # to f32 accumulators).  In a real deployment fuse/transpose the params once,
    # outside the per-bag call.
    args = (
        h.astype(bf16),                                                        # (N, L)
        params["wfc"].astype(bf16), params["bfc"].astype(f32),                 # (L,H),(1,H)
        jnp.concatenate([params["wa"], params["wb"]], axis=1).astype(bf16),    # (H, 2D)
        jnp.concatenate([params["ba"], params["bb"]], axis=1).astype(f32),     # (1, 2D)
        params["wc"].astype(bf16), params["bc"].astype(f32),                   # (D,C),(1,C)
        params["wcls"].T.astype(bf16),                                         # (H, C)
        params["bcls"].reshape(1, C).astype(f32),                              # (1, C)
    )

    flops = 2 * N * (L * H + H * (2 * D) + D * C + H * C)
    transcendentals = N * (2 * D + C)
    bytes_accessed = sum(a.size * a.dtype.itemsize for a in args) + C * 4

    vmem = lambda: pl.BlockSpec(memory_space=pltpu.MemorySpace.VMEM)
    logits = pl.pallas_call(
        functools.partial(clam_mb_time_kernel, D=D),
        out_shape=jax.ShapeDtypeStruct((1, C), jnp.float32),
        in_specs=[vmem() for _ in args],
        out_specs=vmem(),
        cost_estimate=pl.CostEstimate(flops=flops,
                                      transcendentals=transcendentals,
                                      bytes_accessed=bytes_accessed),
    )(*args)
    return logits                                                              # (1, C)


def make_params(key, L, H, D, C):
    """Deterministic synthetic parameters (xavier-ish), weights as (in, out)."""
    ks = jax.random.split(key, 11)

    def lin(k, fan_in, fan_out):
        scale = (2.0 / (fan_in + fan_out)) ** 0.5
        return scale * jax.random.normal(k, (fan_in, fan_out), jnp.float32)

    return {
        "wfc": lin(ks[0], L, H), "bfc": 0.01 * jax.random.normal(ks[1], (1, H), jnp.float32),
        "wa": lin(ks[2], H, D), "ba": 0.01 * jax.random.normal(ks[3], (1, D), jnp.float32),
        "wb": lin(ks[4], H, D), "bb": 0.01 * jax.random.normal(ks[5], (1, D), jnp.float32),
        "wc": lin(ks[6], D, C), "bc": 0.01 * jax.random.normal(ks[7], (1, C), jnp.float32),
        # stacked per-class Linear(H, 1) classifiers (PyTorch layout: (out=C, in=H))
        "wcls": lin(ks[8], H, C).T,                                    # (C, H)
        "bcls": 0.01 * jax.random.normal(ks[9], (C, 1), jnp.float32),  # (C, 1)
    }


def reference_forward(h, p):
    """PyTorch-faithful reference (softmax(A.T) @ h1, then per-class classifiers),
    using the kernel's mixed-precision policy (bf16 matmul inputs, f32 accumulation)
    so the comparison isolates structural/algebraic correctness."""
    bf, f32 = jnp.bfloat16, jnp.float32
    dot = lambda x, w: jnp.dot(x.astype(bf), w.astype(bf), preferred_element_type=f32)
    h1 = jax.nn.relu(dot(h, p["wfc"]) + p["bfc"])          # (N, H)
    a = jnp.tanh(dot(h1, p["wa"]) + p["ba"])               # (N, D)
    b = jax.nn.sigmoid(dot(h1, p["wb"]) + p["bb"])         # (N, D)
    A = dot(a * b, p["wc"]) + p["bc"]                      # (N, C)
    A = jax.nn.softmax(A.T, axis=1)                        # (C, N)  softmax over instances
    h1q = h1.astype(bf).astype(f32)
    wclsq = p["wcls"].astype(bf).astype(f32)
    M = A @ h1q                                            # (C, H)
    logits = jnp.sum(M * wclsq, axis=1, keepdims=True) + p["bcls"]   # (C, 1)
    return logits.T                                        # (1, C)


if __name__ == "__main__":
    # Sizes implied by the module: size_dict['small'] = [1024, 512, 256], n_classes=21.
    N, L, H, D, C = 64, 1024, 512, 256, 21

    key = jax.random.PRNGKey(0)
    k_h, k_p = jax.random.split(key)
    h = jax.random.normal(k_h, (N, L), jnp.float32)
    params = make_params(k_p, L, H, D, C)

    logits = clam_mb_time_forward(h, params)
    logits = jax.block_until_ready(logits)

    ref = reference_forward(h, params)
    assert logits.shape == (1, C), logits.shape
    assert jnp.allclose(logits, ref, rtol=1e-2, atol=1e-2), (logits, ref)

    # TODO(synk): dropout branches, attention_only early-return and gc.collect()
    # are inference-irrelevant / host-side and are not represented in the kernel.
    print("KERNEL_OK")
</pallas_src>

<mosaic_0001>
module attributes {stable_mosaic.version = 11 : i64} {
  func.func @clam_mb_time_kernel(%arg0: memref<64x1024xbf16, #tpu.memory_space<vmem>>, %arg1: memref<1024x512xbf16, #tpu.memory_space<vmem>>, %arg2: memref<1x512xf32, #tpu.memory_space<vmem>>, %arg3: memref<512x512xbf16, #tpu.memory_space<vmem>>, %arg4: memref<1x512xf32, #tpu.memory_space<vmem>>, %arg5: memref<256x21xbf16, #tpu.memory_space<vmem>>, %arg6: memref<1x21xf32, #tpu.memory_space<vmem>>, %arg7: memref<512x21xbf16, #tpu.memory_space<vmem>>, %arg8: memref<1x21xf32, #tpu.memory_space<vmem>>, %arg9: memref<1x21xf32, #tpu.memory_space<vmem>>) attributes {dimension_semantics = [], scalar_prefetch = 0 : i64, scratch_operands = 0 : i64, tpu.core_type = #tpu.core_type<tc>} {
    %c0 = arith.constant 0 : index
    %c0_0 = arith.constant 0 : index
    %0 = vector.load %arg0[%c0, %c0_0] : memref<64x1024xbf16, #tpu.memory_space<vmem>>, vector<64x1024xbf16>
    %c0_1 = arith.constant 0 : index
    %c0_2 = arith.constant 0 : index
    %1 = vector.load %arg1[%c0_1, %c0_2] : memref<1024x512xbf16, #tpu.memory_space<vmem>>, vector<1024x512xbf16>
    %cst = arith.constant dense<0.000000e+00> : vector<64x512xf32>
    %2 = tpu.matmul %0, %1, %cst {dimension_numbers = #tpu.dot_dimension_numbers<[1], [0], [0], [1], [0, 0, 1, 1], [], []>} : vector<64x1024xbf16>, vector<1024x512xbf16>, vector<64x512xf32> -> vector<64x512xf32>
    %c0_3 = arith.constant 0 : index
    %c0_4 = arith.constant 0 : index
    %3 = vector.load %arg2[%c0_3, %c0_4] : memref<1x512xf32, #tpu.memory_space<vmem>>, vector<1x512xf32>
    %4 = vector.broadcast %3 : vector<1x512xf32> to vector<64x512xf32>
    %5 = arith.addf %2, %4 : vector<64x512xf32>
    %cst_5 = arith.constant 0.000000e+00 : f32
    %6 = vector.broadcast %cst_5 : f32 to vector<64x512xf32>
    %7 = arith.maximumf %5, %6 : vector<64x512xf32>
    %8 = arith.truncf %7 : vector<64x512xf32> to vector<64x512xbf16>
    %c0_6 = arith.constant 0 : index
    %c0_7 = arith.constant 0 : index
    %9 = vector.load %arg3[%c0_6, %c0_7] : memref<512x512xbf16, #tpu.memory_space<vmem>>, vector<512x512xbf16>
    %cst_8 = arith.constant dense<0.000000e+00> : vector<64x512xf32>
    %10 = tpu.matmul %8, %9, %cst_8 {dimension_numbers = #tpu.dot_dimension_numbers<[1], [0], [0], [1], [0, 0, 1, 1], [], []>} : vector<64x512xbf16>, vector<512x512xbf16>, vector<64x512xf32> -> vector<64x512xf32>
    %c0_9 = arith.constant 0 : index
    %c0_10 = arith.constant 0 : index
    %11 = vector.load %arg4[%c0_9, %c0_10] : memref<1x512xf32, #tpu.memory_space<vmem>>, vector<1x512xf32>
    %12 = vector.broadcast %11 : vector<1x512xf32> to vector<64x512xf32>
    %13 = arith.addf %10, %12 : vector<64x512xf32>
    %14 = vector.extract_strided_slice %13 {offsets = [0, 0], sizes = [64, 256], strides = [1, 1]} : vector<64x512xf32> to vector<64x256xf32>
    %15 = math.tanh %14 : vector<64x256xf32>
    %16 = vector.extract_strided_slice %13 {offsets = [0, 256], sizes = [64, 256], strides = [1, 1]} : vector<64x512xf32> to vector<64x256xf32>
    %17 = arith.negf %16 : vector<64x256xf32>
    %18 = math.exp %17 : vector<64x256xf32>
    %cst_11 = arith.constant 1.000000e+00 : f32
    %19 = vector.broadcast %cst_11 : f32 to vector<64x256xf32>
    %20 = arith.addf %19, %18 : vector<64x256xf32>
    %21 = arith.divf %19, %20 : vector<64x256xf32>
    %22 = arith.mulf %15, %21 : vector<64x256xf32>
    %23 = arith.truncf %22 : vector<64x256xf32> to vector<64x256xbf16>
    %c0_12 = arith.constant 0 : index
    %c0_13 = arith.constant 0 : index
    %24 = vector.load %arg5[%c0_12, %c0_13] : memref<256x21xbf16, #tpu.memory_space<vmem>>, vector<256x21xbf16>
    %cst_14 = arith.constant dense<0.000000e+00> : vector<64x21xf32>
    %25 = tpu.matmul %23, %24, %cst_14 {dimension_numbers = #tpu.dot_dimension_numbers<[1], [0], [0], [1], [0, 0, 1, 1], [], []>} : vector<64x256xbf16>, vector<256x21xbf16>, vector<64x21xf32> -> vector<64x21xf32>
    %c0_15 = arith.constant 0 : index
    %c0_16 = arith.constant 0 : index
    %26 = vector.load %arg6[%c0_15, %c0_16] : memref<1x21xf32, #tpu.memory_space<vmem>>, vector<1x21xf32>
    %27 = vector.broadcast %26 : vector<1x21xf32> to vector<64x21xf32>
    %28 = arith.addf %25, %27 : vector<64x21xf32>
    %c0_17 = arith.constant 0 : index
    %c0_18 = arith.constant 0 : index
    %29 = vector.load %arg7[%c0_17, %c0_18] : memref<512x21xbf16, #tpu.memory_space<vmem>>, vector<512x21xbf16>
    %cst_19 = arith.constant dense<0.000000e+00> : vector<64x21xf32>
    %30 = tpu.matmul %8, %29, %cst_19 {dimension_numbers = #tpu.dot_dimension_numbers<[1], [0], [0], [1], [0, 0, 1, 1], [], []>} : vector<64x512xbf16>, vector<512x21xbf16>, vector<64x21xf32> -> vector<64x21xf32>
    %cst_20 = arith.constant dense<0xFF800000> : vector<21xf32>
    %31 = vector.multi_reduction <maximumf>, %28, %cst_20 [0] : vector<64x21xf32> to vector<21xf32>
    %32 = vector.shape_cast %31 : vector<21xf32> to vector<1x21xf32>
    %33 = vector.broadcast %32 : vector<1x21xf32> to vector<64x21xf32>
    %34 = arith.subf %28, %33 : vector<64x21xf32>
    %35 = math.exp %34 : vector<64x21xf32>
    %36 = arith.mulf %35, %30 : vector<64x21xf32>
    %cst_21 = arith.constant dense<0.000000e+00> : vector<21xf32>
    %37 = vector.multi_reduction <add>, %36, %cst_21 [0] : vector<64x21xf32> to vector<21xf32>
    %38 = vector.shape_cast %37 : vector<21xf32> to vector<1x21xf32>
    %cst_22 = arith.constant dense<0.000000e+00> : vector<21xf32>
    %39 = vector.multi_reduction <add>, %35, %cst_22 [0] : vector<64x21xf32> to vector<21xf32>
    %40 = vector.shape_cast %39 : vector<21xf32> to vector<1x21xf32>
    %41 = tpu.reciprocal %40 {approx = true} : vector<1x21xf32> -> vector<1x21xf32>
    %42 = arith.mulf %38, %41 : vector<1x21xf32>
    %c0_23 = arith.constant 0 : index
    %c0_24 = arith.constant 0 : index
    %43 = vector.load %arg8[%c0_23, %c0_24] : memref<1x21xf32, #tpu.memory_space<vmem>>, vector<1x21xf32>
    %44 = arith.addf %42, %43 : vector<1x21xf32>
    %c0_25 = arith.constant 0 : index
    %c0_26 = arith.constant 0 : index
    %45 = vector.load %arg9[%c0_25, %c0_26] : memref<1x21xf32, #tpu.memory_space<vmem>>, vector<1x21xf32>
    tpu.vector_store %arg9[%c0_25, %c0_26], %44 {strides = array<i32>} : memref<1x21xf32, #tpu.memory_space<vmem>>, vector<1x21xf32>,
    return
  }
}

</mosaic_0001>

<bundles_post_ra>
// kernel: tpu_custom_call.1
= control target key start
LH: loop header
LB: loop body
LE: loop exit
PB: predicated region body
PF: predicated region fallthrough
CT: control target
= control target key end

     0   :  { %14 = vsyncpa [#allocation3], 0  ;;  %s6690_s0 = inlined_call_operand.vmem [shape: bf16[64,1024], index: 0, kind: input, shape index: {}]   ;;  %s6691_s1 = inlined_call_operand.hbm [shape: bf16[1024,512], index: 1, kind: input, shape index: {}]   ;;  %s6692_s2 = inlined_call_operand.vmem [shape: f32[1,512], index: 2, kind: input, shape index: {}]   ;;  %s6693_s3 = inlined_call_operand.hbm [shape: bf16[512,512], index: 3, kind: input, shape index: {}]   ;;  %s6694_s4 = inlined_call_operand.vmem [shape: f32[1,512], index: 4, kind: input, shape index: {}]   ;;  %s6695_s5 = inlined_call_operand.vmem [shape: bf16[256,21], index: 5, kind: input, shape index: {}]   ;;  %s6696_s6 = inlined_call_operand.vmem [shape: f32[1,21], index: 6, kind: input, shape index: {}]   ;;  %s6697_s7 = inlined_call_operand.vmem [shape: bf16[512,21], index: 7, kind: input, shape index: {}]   ;;  %s6698_s8 = inlined_call_operand.vmem [shape: f32[1,21], index: 8, kind: input, shape index: {}]   ;;  %s6699_s9 = inlined_call_operand.hbm [shape: f32[1,21], index: 9, kind: output, shape index: {}]  }
   0x1   :  { %15 = vsyncpa [#allocation6], 0 }
   0x2   :  { %16 = vsyncpa [#allocation4], 0  ;;  %s5990_s30 = smov [#allocation2]   ;;  %s5918_s13 = scalar_lea.hbm %s6691_s1, 32768 }
   0x3   :  { %s24_s10 = sshll.u32 %s5990_s30, 4  ;;  %p5919_p0 = scmp.ne.s32.totalorder %s6691_s1, %s5918_s13  ;;  %s25_s10 = int_to_ptr.vmem [resolvable:$true] %s24_s10 }
   0x4   :  { %p5922_p1 = scmp.lt.u32.totalorder %s5918_s13, %s6691_s1 }
   0x6   :  { %p5924_p2 = pnand %p5922_p1, %p5919_p0 }
   0x8   :  { %5927 = shalt.err (!%p5924_p2)
}
   0x9   :  { %s5928_s18 = scalar_lea.vmem %s25_s10, 32768  ;;  %p5933_p4 = scmp.lt.s32.totalorder %s25_s10, %s25_s10 }
   0xa   :  { %p5929_p3 = scmp.ne.s32.totalorder %s25_s10, %s5928_s18  ;;  %p5934_p5 = scmp.lt.s32.totalorder %s5928_s18, %s5928_s18 }
   0xc   :  { %p5935_p6 = por %p5934_p5, %p5933_p4 }
   0xe   :  { %p5936_p7 = pnand %p5935_p6, %p5929_p3 }
  0x10   :  { %5939 = shalt.err (!%p5936_p7)
}
  0x11   :  { %s5991_s19 = smov 256   ;;  %s5992_s20 = smov 16  }
  0x12   :  { %30 = dma.hbm_to_vmem [thread:$0]  %s6691_s1, 32768, %s25_s10, [#allocation3], %s5991_s19, %s5991_s19, %s5992_s20  }
  0x13   :  { %s5993_s23 = smov [#allocation5]   ;;  %s5940_s27 = scalar_lea.hbm %s6693_s3, 16384 }
  0x14   :  { %s38_s24 = sshll.u32 %s5993_s23, 4  ;;  %p5941_p8 = scmp.ne.s32.totalorder %s6693_s3, %s5940_s27  ;;  %s39_s24 = int_to_ptr.vmem [resolvable:$true] %s38_s24 }
  0x15   :  { %p5944_p9 = scmp.lt.u32.totalorder %s5940_s27, %s6693_s3 }
  0x17   :  { %p5946_p10 = pnand %p5944_p9, %p5941_p8 }
  0x19   :  { %5949 = shalt.err (!%p5946_p10)
}
  0x1a   :  { %s5950_s12 = scalar_lea.vmem %s39_s24, 16384  ;;  %p5955_p12 = scmp.lt.s32.totalorder %s39_s24, %s39_s24 }
  0x1b   :  { %p5951_p11 = scmp.ne.s32.totalorder %s39_s24, %s5950_s12  ;;  %p5956_p13 = scmp.lt.s32.totalorder %s5950_s12, %s5950_s12 }
  0x1d   :  { %p5957_p0 = por %p5956_p13, %p5955_p12 }
  0x1f   :  { %p5958_p1 = pnand %p5957_p0, %p5951_p11 }
  0x21   :  { %5961 = shalt.err (!%p5958_p1)
}
  0x22   :  { %44 = dma.hbm_to_vmem [thread:$0]  %s6693_s3, 16384, %s39_s24, [#allocation6], %s5991_s19, %s5991_s19, %s5992_s20  }
  0x23   :  { %5984 = dma.done.wait [#allocation3], 32768  }
  0x24   :  { %5985 = vsyncadd [#allocation3], 4294934528 }
  0x25   :  { %5986 = dma.done.wait [#allocation6], 16384  }
  0x26   :  { %5987 = vsyncadd [#allocation6], 4294950912  ;;  %v5180_v0 = vld [vmem:[#allocation2 + $0x4] ss:$16 sps:$4 sm:$0xff]   ;;  %v5182_v1 = vld [vmem:[#allocation2 + $0xc] ss:$16 sps:$4 sm:$0xff]  }
  0x27   :  { %1812 = vmatprep.subr.bf16.mxu0 %v5180_v0  ;;  %v5184_v2 = vld [vmem:[#allocation2] ss:$16 sps:$4 sm:$0xff]   ;;  %v5185_v3 = vld [vmem:[#allocation2 + $0x8] ss:$16 sps:$4 sm:$0xff]   ;;  %2104 = vmatprep.subr.bf16.mxu1 %v5182_v1  ;;  %v5186_v4 = vld [vmem:[#allocation2 + $0x24] ss:$16 sps:$4 sm:$0xff]  }
  0x28   :  { %1813 = vmatpush1.bf16.msra.mxu0 %v5184_v2  ;;  %2105 = vmatpush1.bf16.msra.mxu1 %v5185_v3  ;;  %v5188_v5 = vld [vmem:[#allocation2 + $0x2c] ss:$16 sps:$4 sm:$0xff]   ;;  %v5190_v6 = vld [vmem:[#allocation2 + $0x20] ss:$16 sps:$4 sm:$0xff]   ;;  %v5191_v7 = vld [vmem:[#allocation2 + $0x28] ss:$16 sps:$4 sm:$0xff]  }
  0x29   :  { %1814 = vmatprep.subr.bf16.mxu0 %v5186_v4  ;;  %2106 = vmatprep.subr.bf16.mxu1 %v5188_v5  ;;  %v5192_v8 = vld [vmem:[#allocation2 + $0x44] ss:$16 sps:$4 sm:$0xff]   ;;  %v5194_v9 = vld [vmem:[#allocation2 + $0x4c] ss:$16 sps:$4 sm:$0xff]   ;;  %v5196_v10 = vld [vmem:[#allocation2 + $0x40] ss:$16 sps:$4 sm:$0xff]  }
  0x2a   :  { %v5197_v11 = vld [vmem:[#allocation2 + $0x48] ss:$16 sps:$4 sm:$0xff]   ;;  %v5198_v12 = vld [vmem:[#allocation2 + $0x64] ss:$16 sps:$4 sm:$0xff]   ;;  %v5200_v13 = vld [vmem:[#allocation2 + $0x6c] ss:$16 sps:$4 sm:$0xff]  }
  0x2b   :  { %v5202_v14 = vld [vmem:[#allocation2 + $0x60] ss:$16 sps:$4 sm:$0xff]   ;;  %v5203_v15 = vld [vmem:[#allocation2 + $0x68] ss:$16 sps:$4 sm:$0xff]   ;;  %v5204_v16 = vld [vmem:[#allocation2 + $0x84] ss:$16 sps:$4 sm:$0xff]  }
  0x2c   :  { %1815 = vmatpush1.bf16.msra.mxu0 %v5190_v6  ;;  %2107 = vmatpush1.bf16.msra.mxu1 %v5191_v7  ;;  %v5206_v17 = vld [vmem:[#allocation2 + $0x8c] ss:$16 sps:$4 sm:$0xff]   ;;  %v5208_v18 = vld [vmem:[#allocation2 + $0x80] ss:$16 sps:$4 sm:$0xff]   ;;  %v5209_v19 = vld [vmem:[#allocation2 + $0x88] ss:$16 sps:$4 sm:$0xff]  }
  0x2d   :  { %1816 = vmatprep.subr.bf16.mxu0 %v5192_v8  ;;  %2108 = vmatprep.subr.bf16.mxu1 %v5194_v9  ;;  %v5210_v20 = vld [vmem:[#allocation2 + $0xa4] ss:$16 sps:$4 sm:$0xff]   ;;  %v5212_v21 = vld [vmem:[#allocation2 + $0xac] ss:$16 sps:$4 sm:$0xff]   ;;  %v5214_v22 = vld [vmem:[#allocation2 + $0xa0] ss:$16 sps:$4 sm:$0xff]  }
  0x2e   :  { %v5215_v23 = vld [vmem:[#allocation2 + $0xa8] ss:$16 sps:$4 sm:$0xff]   ;;  %v5216_v24 = vld [vmem:[#allocation2 + $0xc4] ss:$16 sps:$4 sm:$0xff]   ;;  %v5218_v25 = vld [vmem:[#allocation2 + $0xcc] ss:$16 sps:$4 sm:$0xff]  }
  0x2f   :  { %v5220_v26 = vld [vmem:[#allocation2 + $0xc0] ss:$16 sps:$4 sm:$0xff]   ;;  %v5221_v27 = vld [vmem:[#allocation2 + $0xc8] ss:$16 sps:$4 sm:$0xff]   ;;  %v5222_v28 = vld [vmem:[#allocation2 + $0xe4] ss:$16 sps:$4 sm:$0xff]  }
  0x30   :  { %1817 = vmatpush1.bf16.msra.mxu0 %v5196_v10  ;;  %2109 = vmatpush1.bf16.msra.mxu1 %v5197_v11  ;;  %v5224_v29 = vld [vmem:[#allocation2 + $0xec] ss:$16 sps:$4 sm:$0xff]   ;;  %v5226_v30 = vld [vmem:[#allocation2 + $0xe0] ss:$16 sps:$4 sm:$0xff]   ;;  %v5227_v31 = vld [vmem:[#allocation2 + $0xe8] ss:$16 sps:$4 sm:$0xff]  }
  0x31   :  { %1818 = vmatprep.subr.bf16.mxu0 %v5198_v12  ;;  %2110 = vmatprep.subr.bf16.mxu1 %v5200_v13  ;;  %v5228_v32 = vld [vmem:[#allocation2 + $0x104] ss:$16 sps:$4 sm:$0xff]   ;;  %v5230_v33 = vld [vmem:[#allocation2 + $0x10c] ss:$16 sps:$4 sm:$0xff]   ;;  %v5232_v34 = vld [vmem:[#allocation2 + $0x100] ss:$16 sps:$4 sm:$0xff]  }
  0x32   :  { %v5233_v35 = vld [vmem:[#allocation2 + $0x108] ss:$16 sps:$4 sm:$0xff]   ;;  %v5234_v36 = vld [vmem:[#allocation2 + $0x124] ss:$16 sps:$4 sm:$0xff]   ;;  %v5236_v37 = vld [vmem:[#allocation2 + $0x12c] ss:$16 sps:$4 sm:$0xff]  }
  0x33   :  { %v5238_v38 = vld [vmem:[#allocation2 + $0x120] ss:$16 sps:$4 sm:$0xff]   ;;  %v5239_v39 = vld [vmem:[#allocation2 + $0x128] ss:$16 sps:$4 sm:$0xff]   ;;  %v5240_v40 = vld [vmem:[#allocation2 + $0x144] ss:$16 sps:$4 sm:$0xff]  }
  0x34   :  { %1819 = vmatpush1.bf16.msra.mxu0 %v5202_v14  ;;  %2111 = vmatpush1.bf16.msra.mxu1 %v5203_v15  ;;  %v5242_v41 = vld [vmem:[#allocation2 + $0x14c] ss:$16 sps:$4 sm:$0xff]   ;;  %v5244_v42 = vld [vmem:[#allocation2 + $0x140] ss:$16 sps:$4 sm:$0xff]   ;;  %v5245_v43 = vld [vmem:[#allocation2 + $0x148] ss:$16 sps:$4 sm:$0xff]  }
  0x35   :  { %1820 = vmatprep.subr.bf16.mxu0 %v5204_v16  ;;  %2112 = vmatprep.subr.bf16.mxu1 %v5206_v17  ;;  %v5246_v44 = vld [vmem:[#allocation2 + $0x164] ss:$16 sps:$4 sm:$0xff]   ;;  %v5248_v45 = vld [vmem:[#allocation2 + $0x16c] ss:$16 sps:$4 sm:$0xff]   ;;  %v5250_v48 = vld [vmem:[#allocation2 + $0x160] ss:$16 sps:$4 sm:$0xff]  }
  0x36   :  { %v62_v46 = vld [vmem:[%s6690_s0] sm:$0xff]  ;;  %v5251_v49 = vld [vmem:[#allocation2 + $0x168] ss:$16 sps:$4 sm:$0xff]   ;;  %v5254_v52 = vld [vmem:[#allocation2 + $0x18c] ss:$16 sps:$4 sm:$0xff]   ;;  %vm4248_vm0 = vcmask 171008  }
  0x37   :  { %v66_v47 = vld [vmem:[%s6690_s0 + $0x20] sm:$0xff]  ;;  %v5257_v54 = vld [vmem:[#allocation2 + $0x188] ss:$16 sps:$4 sm:$0xff]   ;;  %v5260_v56 = vld [vmem:[#allocation2 + $0x1ac] ss:$16 sps:$4 sm:$0xff]   ;;  %s5994_s29 = smov [#allocation7]  }
  0x38   :  { %1821 = vmatpush1.bf16.msra.mxu0 %v5208_v18  ;;  %2113 = vmatpush1.bf16.msra.mxu1 %v5209_v19  ;;  %v4367_v50 = vcombine.high %v62_v46, %v66_v47  ;;  %v5252_v51 = vld [vmem:[#allocation2 + $0x184] ss:$16 sps:$4 sm:$0xff]   ;;  %v5256_v53 = vld [vmem:[#allocation2 + $0x180] ss:$16 sps:$4 sm:$0xff]   ;;  %v5263_v58 = vld [vmem:[#allocation2 + $0x1a8] ss:$16 sps:$4 sm:$0xff]   ;;  %v4366_v5 = vcombine.low %v62_v46, %v66_v47 }
  0x39   :  { %1822 = vmatprep.subr.bf16.mxu0 %v5210_v20  ;;  %2114 = vmatprep.subr.bf16.mxu1 %v5212_v21  ;;  %v5258_v55 = vld [vmem:[#allocation2 + $0x1a4] ss:$16 sps:$4 sm:$0xff]   ;;  %v5262_v57 = vld [vmem:[#allocation2 + $0x1a0] ss:$16 sps:$4 sm:$0xff]   ;;  %v5266_v60 = vld [vmem:[#allocation2 + $0x1cc] ss:$16 sps:$4 sm:$0xff]  }
  0x3a   :  { %1844 = vmatprep.mubr.bf16.mxu0 %v4367_v50  ;;  %2136 = vmatprep.mubr.bf16.mxu1 %v4367_v50  ;;  %v5264_v59 = vld [vmem:[#allocation2 + $0x1c4] ss:$16 sps:$4 sm:$0xff]   ;;  %v5268_v61 = vld [vmem:[#allocation2 + $0x1c0] ss:$16 sps:$4 sm:$0xff]   ;;  %v5269_v62 = vld [vmem:[#allocation2 + $0x1c8] ss:$16 sps:$4 sm:$0xff]  }
  0x3b   :  { %v5270_v63 = vld [vmem:[#allocation2 + $0x1e4] ss:$16 sps:$4 sm:$0xff]   ;;  %v5272_v0 = vld [vmem:[#allocation2 + $0x1ec] ss:$16 sps:$4 sm:$0xff]   ;;  %v5274_v1 = vld [vmem:[#allocation2 + $0x1e0] ss:$16 sps:$4 sm:$0xff]  }
  0x3c   :  { %1823 = vmatpush1.bf16.msra.mxu0 %v5214_v22  ;;  %2115 = vmatpush1.bf16.msra.mxu1 %v5215_v23  ;;  %v5275_v2 = vld [vmem:[#allocation2 + $0x1e8] ss:$16 sps:$4 sm:$0xff]   ;;  %v5278_v3 = vld [vmem:[#allocation2 + $0x204] ss:$16 sps:$4 sm:$0xff]   ;;  %v5281_v4 = vld [vmem:[#allocation2 + $0x20c] ss:$16 sps:$4 sm:$0xff]  }
  0x3d   :  { %1824 = vmatprep.subr.bf16.mxu0 %v5216_v24  ;;  %2116 = vmatprep.subr.bf16.mxu1 %v5218_v25  ;;  %v5276_v6 = vld [vmem:[#allocation2 + $0x200] ss:$16 sps:$4 sm:$0xff]   ;;  %v5279_v7 = vld [vmem:[#allocation2 + $0x208] ss:$16 sps:$4 sm:$0xff]   ;;  %v5284_v8 = vld [vmem:[#allocation2 + $0x224] ss:$16 sps:$4 sm:$0xff]  }
  0x3e   :  { %v5287_v9 = vld [vmem:[#allocation2 + $0x22c] ss:$16 sps:$4 sm:$0xff]   ;;  %v5282_v10 = vld [vmem:[#allocation2 + $0x220] ss:$16 sps:$4 sm:$0xff]   ;;  %v5285_v11 = vld [vmem:[#allocation2 + $0x228] ss:$16 sps:$4 sm:$0xff]  }
  0x3f   :  { %v5290_v12 = vld [vmem:[#allocation2 + $0x244] ss:$16 sps:$4 sm:$0xff]   ;;  %v5293_v13 = vld [vmem:[#allocation2 + $0x24c] ss:$16 sps:$4 sm:$0xff]   ;;  %v5288_v16 = vld [vmem:[#allocation2 + $0x240] ss:$16 sps:$4 sm:$0xff]  }
  0x40   :  { %1825 = vmatpush1.bf16.msra.mxu0 %v5220_v26  ;;  %2117 = vmatpush1.bf16.msra.mxu1 %v5221_v27  ;;  %v70_v14 = vld [vmem:[%s6690_s0 + $0x40] sm:$0xff]  ;;  %v5291_v17 = vld [vmem:[#allocation2 + $0x248] ss:$16 sps:$4 sm:$0xff]   ;;  %v5299_v21 = vld [vmem:[#allocation2 + $0x26c] ss:$16 sps:$4 sm:$0xff]   ;;  %vm4348_vm1 = vcmask 163840  }
  0x41   :  { %1826 = vmatprep.subr.bf16.mxu0 %v5222_v28  ;;  %2118 = vmatprep.subr.bf16.mxu1 %v5224_v29  ;;  %v74_v15 = vld [vmem:[%s6690_s0 + $0x60] sm:$0xff]  ;;  %v5297_v23 = vld [vmem:[#allocation2 + $0x268] ss:$16 sps:$4 sm:$0xff]   ;;  %v5305_v27 = vld [vmem:[#allocation2 + $0x28c] ss:$16 sps:$4 sm:$0xff]  }
  0x42   :  { %v4375_v18 = vcombine.high %v70_v14, %v74_v15  ;;  %v4374_v19 = vcombine.low %v70_v14, %v74_v15  ;;  %v5296_v20 = vld [vmem:[#allocation2 + $0x264] ss:$16 sps:$4 sm:$0xff]   ;;  %v5294_v22 = vld [vmem:[#allocation2 + $0x260] ss:$16 sps:$4 sm:$0xff]   ;;  %v5323_v47 = vld [vmem:[#allocation2 + $0x2ec] ss:$16 sps:$4 sm:$0xff]  }
  0x43   :  { %v78_v24 = vld [vmem:[%s6690_s0 + $0x80] sm:$0xff]  ;;  %v5321_v50 = vld [vmem:[#allocation2 + $0x2e8] ss:$16 sps:$4 sm:$0xff]  }
  0x44   :  { %1827 = vmatpush1.bf16.msra.mxu0 %v5226_v30  ;;  %2119 = vmatpush1.bf16.msra.mxu1 %v5227_v31  ;;  %v82_v25 = vld [vmem:[%s6690_s0 + $0xa0] sm:$0xff]  ;;  %v5303_v31 = vld [vmem:[#allocation2 + $0x288] ss:$16 sps:$4 sm:$0xff]  }
  0x45   :  { %1828 = vmatprep.subr.bf16.mxu0 %v5228_v32  ;;  %2120 = vmatprep.subr.bf16.mxu1 %v5230_v33  ;;  %v5302_v26 = vld [vmem:[#allocation2 + $0x284] ss:$16 sps:$4 sm:$0xff]   ;;  %v4383_v28 = vcombine.high %v78_v24, %v82_v25  ;;  %v4382_v29 = vcombine.low %v78_v24, %v82_v25  ;;  %v5300_v30 = vld [vmem:[#allocation2 + $0x280] ss:$16 sps:$4 sm:$0xff]   ;;  %v5311_v33 = vld [vmem:[#allocation2 + $0x2ac] ss:$16 sps:$4 sm:$0xff]  }
  0x46   :  { %v5308_v32 = vld [vmem:[#allocation2 + $0x2a4] ss:$16 sps:$4 sm:$0xff]   ;;  %v5363_v14 = vld [vmem:[#allocation2 + $0x3c8] ss:$16 sps:$4 sm:$0xff]  }
  0x47   :  { %v5320_v46 = vld [vmem:[#allocation2 + $0x2e4] ss:$16 sps:$4 sm:$0xff]   ;;  %v71_v24 = vld [vmem:[%s6690_s0 + $0x48] sm:$0xff] }
  0x48   :  { %1829 = vmatpush1.bf16.msra.mxu0 %v5232_v34  ;;  %2121 = vmatpush1.bf16.msra.mxu1 %v5233_v35  ;;  %v86_v34 = vld [vmem:[%s6690_s0 + $0xc0] sm:$0xff]  ;;  %v75_v25 = vld [vmem:[%s6690_s0 + $0x68] sm:$0xff] }
  0x49   :  { %1830 = vmatprep.subr.bf16.mxu0 %v5234_v36  ;;  %2122 = vmatprep.subr.bf16.mxu1 %v5236_v37  ;;  %v90_v35 = vld [vmem:[%s6690_s0 + $0xe0] sm:$0xff]  ;;  %v5309_v37 = vld [vmem:[#allocation2 + $0x2a8] ss:$16 sps:$4 sm:$0xff]  }
  0x4a   :  { %v5306_v36 = vld [vmem:[#allocation2 + $0x2a0] ss:$16 sps:$4 sm:$0xff]   ;;  %v5368_v15 = vld [vmem:[#allocation2 + $0x3e4] ss:$16 sps:$4 sm:$0xff]  }
  0x4c   :  { %1831 = vmatpush1.bf16.msra.mxu0 %v5238_v38  ;;  %2123 = vmatpush1.bf16.msra.mxu1 %v5239_v39  ;;  %v4391_v38 = vcombine.high %v86_v34, %v90_v35  ;;  %v5314_v39 = vld [vmem:[#allocation2 + $0x2c4] ss:$16 sps:$4 sm:$0xff]  }
  0x4d   :  { %1832 = vmatprep.subr.bf16.mxu0 %v5240_v40  ;;  %2124 = vmatprep.subr.bf16.mxu1 %v5242_v41  ;;  %v5317_v40 = vld [vmem:[#allocation2 + $0x2cc] ss:$16 sps:$4 sm:$0xff]   ;;  %v5312_v41 = vld [vmem:[#allocation2 + $0x2c0] ss:$16 sps:$4 sm:$0xff]  }
  0x50   :  { %1833 = vmatpush1.bf16.msra.mxu0 %v5244_v42  ;;  %2125 = vmatpush1.bf16.msra.mxu1 %v5245_v43  ;;  %v5315_v42 = vld [vmem:[#allocation2 + $0x2c8] ss:$16 sps:$4 sm:$0xff]   ;;  %v4390_v43 = vcombine.low %v86_v34, %v90_v35  ;;  %v4376_v34 = vcombine.low %v71_v24, %v75_v25 }
  0x51   :  { %1834 = vmatprep.subr.bf16.mxu0 %v5246_v44  ;;  %2126 = vmatprep.subr.bf16.mxu1 %v5248_v45  ;;  %v6096_v44 = vld [vmem:[%s6690_s0 + $0x8] sm:$0xff] }
  0x52   :  { %v6101_v45 = vld [vmem:[%s6690_s0 + $0x28] sm:$0xff] }
  0x53   :  { %v83_v35 = vld [vmem:[%s6690_s0 + $0xa8] sm:$0xff] }
  0x54   :  { %1835 = vmatpush1.bf16.msra.mxu0 %v5250_v48  ;;  %2127 = vmatpush1.bf16.msra.mxu1 %v5251_v49  ;;  %v4369_v48 = vcombine.high %v6096_v44, %v6101_v45  ;;  %v5318_v49 = vld [vmem:[#allocation2 + $0x2e0] ss:$16 sps:$4 sm:$0xff]  }
  0x55   :  { %1836 = vmatprep.subr.bf16.mxu0 %v5252_v51  ;;  %2128 = vmatprep.subr.bf16.mxu1 %v5254_v52  ;;  %v5326_v51 = vld [vmem:[#allocation2 + $0x304] ss:$16 sps:$4 sm:$0xff]   ;;  %v5329_v52 = vld [vmem:[#allocation2 + $0x30c] ss:$16 sps:$4 sm:$0xff]  }
  0x58   :  { %1837 = vmatpush1.bf16.msra.mxu0 %v5256_v53  ;;  %2129 = vmatpush1.bf16.msra.mxu1 %v5257_v54  ;;  %v5324_v53 = vld [vmem:[#allocation2 + $0x300] ss:$16 sps:$4 sm:$0xff]   ;;  %v5327_v54 = vld [vmem:[#allocation2 + $0x308] ss:$16 sps:$4 sm:$0xff]  }
  0x59   :  { %1838 = vmatprep.subr.bf16.mxu0 %v5258_v55  ;;  %2130 = vmatprep.subr.bf16.mxu1 %v5260_v56  ;;  %v5332_v55 = vld [vmem:[#allocation2 + $0x324] ss:$16 sps:$4 sm:$0xff]   ;;  %v5335_v56 = vld [vmem:[#allocation2 + $0x32c] ss:$16 sps:$4 sm:$0xff]  }
  0x5c   :  { %1839 = vmatpush1.bf16.msra.mxu0 %v5262_v57  ;;  %2131 = vmatpush1.bf16.msra.mxu1 %v5263_v58  ;;  %v5330_v57 = vld [vmem:[#allocation2 + $0x320] ss:$16 sps:$4 sm:$0xff]   ;;  %v5333_v58 = vld [vmem:[#allocation2 + $0x328] ss:$16 sps:$4 sm:$0xff]  }
  0x5d   :  { %1840 = vmatprep.subr.bf16.mxu0 %v5264_v59  ;;  %2132 = vmatprep.subr.bf16.mxu1 %v5266_v60  ;;  %v5338_v59 = vld [vmem:[#allocation2 + $0x344] ss:$16 sps:$4 sm:$0xff]   ;;  %v5341_v60 = vld [vmem:[#allocation2 + $0x34c] ss:$16 sps:$4 sm:$0xff]  }
  0x60   :  { %1841 = vmatpush1.bf16.msra.mxu0 %v5268_v61  ;;  %2133 = vmatpush1.bf16.msra.mxu1 %v5269_v62  ;;  %v5336_v61 = vld [vmem:[#allocation2 + $0x340] ss:$16 sps:$4 sm:$0xff]   ;;  %v5339_v62 = vld [vmem:[#allocation2 + $0x348] ss:$16 sps:$4 sm:$0xff]  }
  0x61   :  { %1842 = vmatprep.subr.bf16.mxu0 %v5270_v63  ;;  %2134 = vmatprep.subr.bf16.mxu1 %v5272_v0  ;;  %v5344_v63 = vld [vmem:[#allocation2 + $0x364] ss:$16 sps:$4 sm:$0xff]   ;;  %v5347_v0 = vld [vmem:[#allocation2 + $0x36c] ss:$16 sps:$4 sm:$0xff]  }
  0x64   :  { %1843 = vmatpush1.bf16.msra.mxu0 %v5274_v1  ;;  %2135 = vmatpush1.bf16.msra.mxu1 %v5275_v2  ;;  %v5342_v1 = vld [vmem:[#allocation2 + $0x360] ss:$16 sps:$4 sm:$0xff]   ;;  %v5345_v2 = vld [vmem:[#allocation2 + $0x368] ss:$16 sps:$4 sm:$0xff]  }
  0x65   :  { %1885 = vmatprep.subr.bf16.mxu0 %v5278_v3  ;;  %2177 = vmatprep.subr.bf16.mxu1 %v5281_v4  ;;  %v5350_v3 = vld [vmem:[#allocation2 + $0x384] ss:$16 sps:$4 sm:$0xff]   ;;  %v5353_v4 = vld [vmem:[#allocation2 + $0x38c] ss:$16 sps:$4 sm:$0xff]  }
  0x67   :  { %1845 = vmatmul.mubr.bf16.vlgmr.msra.gmra.mrb[0].mxu0 %v4366_v5  ;;  %2137 = vmatmul.mubr.bf16.vlgmr.msra.gmra.mrb[0].mxu1 %v4366_v5  ;;  %v5348_v5 = vld [vmem:[#allocation2 + $0x380] ss:$16 sps:$4 sm:$0xff]  }
  0x68   :  { %1886 = vmatpush1.bf16.msra.mxu0 %v5276_v6  ;;  %2178 = vmatpush1.bf16.msra.mxu1 %v5279_v7  ;;  %v5351_v6 = vld [vmem:[#allocation2 + $0x388] ss:$16 sps:$4 sm:$0xff]   ;;  %v5356_v7 = vld [vmem:[#allocation2 + $0x3a4] ss:$16 sps:$4 sm:$0xff]  }
  0x69   :  { %1887 = vmatprep.subr.bf16.mxu0 %v5284_v8  ;;  %2179 = vmatprep.subr.bf16.mxu1 %v5287_v9  ;;  %v5359_v8 = vld [vmem:[#allocation2 + $0x3ac] ss:$16 sps:$4 sm:$0xff]   ;;  %v5354_v9 = vld [vmem:[#allocation2 + $0x3a0] ss:$16 sps:$4 sm:$0xff]  }
  0x6a   :  { %1854 = vmatprep.mubr.bf16.mxu0 %v4375_v18  ;;  %2146 = vmatprep.mubr.bf16.mxu1 %v4375_v18  ;;  %v5369_v18 = vld [vmem:[#allocation2 + $0x3e8] ss:$16 sps:$4 sm:$0xff]  }
  0x6c   :  { %1888 = vmatpush1.bf16.msra.mxu0 %v5282_v10  ;;  %2180 = vmatpush1.bf16.msra.mxu1 %v5285_v11  ;;  %v5357_v10 = vld [vmem:[#allocation2 + $0x3a8] ss:$16 sps:$4 sm:$0xff]   ;;  %v5362_v11 = vld [vmem:[#allocation2 + $0x3c4] ss:$16 sps:$4 sm:$0xff]  }
  0x6d   :  { %1889 = vmatprep.subr.bf16.mxu0 %v5290_v12  ;;  %2181 = vmatprep.subr.bf16.mxu1 %v5293_v13  ;;  %v5365_v12 = vld [vmem:[#allocation2 + $0x3cc] ss:$16 sps:$4 sm:$0xff]   ;;  %v5360_v13 = vld [vmem:[#allocation2 + $0x3c0] ss:$16 sps:$4 sm:$0xff]  }
  0x6f   :  { %1855 = vmatmul.mubr.bf16.gmra.mrb[4].mxu0 %v4374_v19  ;;  %2147 = vmatmul.mubr.bf16.gmra.mrb[4].mxu1 %v4374_v19  ;;  %v5374_v19 = vld [vmem:[#allocation2 + $0x404] ss:$16 sps:$4 sm:$0xff]  }
  0x70   :  { %1890 = vmatpush1.bf16.msra.mxu0 %v5288_v16  ;;  %2182 = vmatpush1.bf16.msra.mxu1 %v5291_v17  ;;  %v5371_v16 = vld [vmem:[#allocation2 + $0x3ec] ss:$16 sps:$4 sm:$0xff]   ;;  %v5366_v17 = vld [vmem:[#allocation2 + $0x3e0] ss:$16 sps:$4 sm:$0xff]  }
  0x71   :  { %1891 = vmatprep.subr.bf16.mxu0 %v5296_v20  ;;  %2183 = vmatprep.subr.bf16.mxu1 %v5299_v21  ;;  %v5377_v20 = vld [vmem:[#allocation2 + $0x40c] ss:$16 sps:$4 sm:$0xff]   ;;  %v5372_v21 = vld [vmem:[#allocation2 + $0x400] ss:$16 sps:$4 sm:$0xff]  }
  0x72   :  { %1864 = vmatprep.mubr.bf16.mxu0 %v4383_v28  ;;  %2156 = vmatprep.mubr.bf16.mxu1 %v4383_v28  ;;  %v4377_v28 = vcombine.high %v71_v24, %v75_v25  ;;  %v5455_v24 = vld [vmem:[#allocation2 + $0x5ac] ss:$16 sps:$4 sm:$0xff]   ;;  %v5450_v25 = vld [vmem:[#allocation2 + $0x5a0] ss:$16 sps:$4 sm:$0xff]  }
  0x74   :  { %1892 = vmatpush1.bf16.msra.mxu0 %v5294_v22  ;;  %2184 = vmatpush1.bf16.msra.mxu1 %v5297_v23  ;;  %v4368_v22 = vcombine.low %v6096_v44, %v6101_v45  ;;  %v5375_v23 = vld [vmem:[#allocation2 + $0x408] ss:$16 sps:$4 sm:$0xff]   ;;  %v5401_v44 = vld [vmem:[#allocation2 + $0x48c] ss:$16 sps:$4 sm:$0xff]  }
  0x75   :  { %1893 = vmatprep.subr.bf16.mxu0 %v5302_v26  ;;  %2185 = vmatprep.subr.bf16.mxu1 %v5305_v27  ;;  %v5380_v26 = vld [vmem:[#allocation2 + $0x424] ss:$16 sps:$4 sm:$0xff]   ;;  %v5383_v27 = vld [vmem:[#allocation2 + $0x42c] ss:$16 sps:$4 sm:$0xff]  }
  0x76   :  { %v87_v45 = vld [vmem:[%s6690_s0 + $0xc8] sm:$0xff] }
  0x77   :  { %1865 = vmatmul.mubr.bf16.gmra.mrb[8].mxu0 %v4382_v29  ;;  %2157 = vmatmul.mubr.bf16.gmra.mrb[8].mxu1 %v4382_v29  ;;  %v5378_v29 = vld [vmem:[#allocation2 + $0x420] ss:$16 sps:$4 sm:$0xff]  }
  0x78   :  { %1894 = vmatpush1.bf16.msra.mxu0 %v5300_v30  ;;  %2186 = vmatpush1.bf16.msra.mxu1 %v5303_v31  ;;  %v5381_v30 = vld [vmem:[#allocation2 + $0x428] ss:$16 sps:$4 sm:$0xff]   ;;  %v5386_v31 = vld [vmem:[#allocation2 + $0x444] ss:$16 sps:$4 sm:$0xff]  }
  0x79   :  { %1895 = vmatprep.subr.bf16.mxu0 %v5308_v32  ;;  %2187 = vmatprep.subr.bf16.mxu1 %v5311_v33  ;;  %v5389_v32 = vld [vmem:[#allocation2 + $0x44c] ss:$16 sps:$4 sm:$0xff]  }
  0x7a   :  { %1874 = vmatprep.mubr.bf16.mxu0 %v4391_v38  ;;  %2166 = vmatprep.mubr.bf16.mxu1 %v4391_v38  ;;  %v79_v33 = vld [vmem:[%s6690_s0 + $0x88] sm:$0xff]  ;;  %v5392_v38 = vld [vmem:[#allocation2 + $0x464] ss:$16 sps:$4 sm:$0xff]  }
  0x7c   :  { %1896 = vmatpush1.bf16.msra.mxu0 %v5306_v36  ;;  %2188 = vmatpush1.bf16.msra.mxu1 %v5309_v37  ;;  %v5384_v36 = vld [vmem:[#allocation2 + $0x440] ss:$16 sps:$4 sm:$0xff]   ;;  %v5387_v37 = vld [vmem:[#allocation2 + $0x448] ss:$16 sps:$4 sm:$0xff]  }
  0x7d   :  { %1897 = vmatprep.subr.bf16.mxu0 %v5314_v39  ;;  %2189 = vmatprep.subr.bf16.mxu1 %v5317_v40  ;;  %v5395_v39 = vld [vmem:[#allocation2 + $0x46c] ss:$16 sps:$4 sm:$0xff]   ;;  %v4385_v40 = vcombine.high %v79_v33, %v83_v35 }
  0x7f   :  { %1875 = vmatmul.mubr.bf16.gmra.mrb[12].mxu0 %v4390_v43  ;;  %2167 = vmatmul.mubr.bf16.gmra.mrb[12].mxu1 %v4390_v43  ;;  %v5398_v43 = vld [vmem:[#allocation2 + $0x484] ss:$16 sps:$4 sm:$0xff]  }
  0x80   :  { %1898 = vmatpush1.bf16.msra.mxu0 %v5312_v41  ;;  %2190 = vmatpush1.bf16.msra.mxu1 %v5315_v42  ;;  %v5390_v41 = vld [vmem:[#allocation2 + $0x460] ss:$16 sps:$4 sm:$0xff]   ;;  %v5393_v42 = vld [vmem:[#allocation2 + $0x468] ss:$16 sps:$4 sm:$0xff]  }
  0x81   :  { %1899 = vmatprep.subr.bf16.mxu0 %v5320_v46  ;;  %2191 = vmatprep.subr.bf16.mxu1 %v5323_v47  ;;  %v4384_v46 = vcombine.low %v79_v33, %v83_v35  ;;  %v91_v47 = vld [vmem:[%s6690_s0 + $0xe8] sm:$0xff]  ;;  %v5462_v33 = vld [vmem:[#allocation2 + $0x5e0] ss:$16 sps:$4 sm:$0xff]   ;;  %v5470_v35 = vld [vmem:[#allocation2 + $0x604] ss:$16 sps:$4 sm:$0xff]  }
  0x82   :  { %1917 = vmatprep.mubr.bf16.mxu0 %v4369_v48  ;;  %2209 = vmatprep.mubr.bf16.mxu1 %v4369_v48  ;;  %v5396_v48 = vld [vmem:[#allocation2 + $0x480] ss:$16 sps:$4 sm:$0xff]  }
  0x84   :  { %1900 = vmatpush1.bf16.msra.mxu0 %v5318_v49  ;;  %2192 = vmatpush1.bf16.msra.mxu1 %v5321_v50  ;;  %v5399_v49 = vld [vmem:[#allocation2 + $0x488] ss:$16 sps:$4 sm:$0xff]   ;;  %v5404_v50 = vld [vmem:[#allocation2 + $0x4a4] ss:$16 sps:$4 sm:$0xff]  }
  0x85   :  { %1901 = vmatprep.subr.bf16.mxu0 %v5326_v51  ;;  %2193 = vmatprep.subr.bf16.mxu1 %v5329_v52  ;;  %v5407_v51 = vld [vmem:[#allocation2 + $0x4ac] ss:$16 sps:$4 sm:$0xff]   ;;  %v4393_v52 = vcombine.high %v87_v45, %v91_v47 }
  0x88   :  { %1902 = vmatpush1.bf16.msra.mxu0 %v5324_v53  ;;  %2194 = vmatpush1.bf16.msra.mxu1 %v5327_v54  ;;  %v5402_v53 = vld [vmem:[#allocation2 + $0x4a0] ss:$16 sps:$4 sm:$0xff]   ;;  %v5405_v54 = vld [vmem:[#allocation2 + $0x4a8] ss:$16 sps:$4 sm:$0xff]  }
  0x89   :  { %1903 = vmatprep.subr.bf16.mxu0 %v5332_v55  ;;  %2195 = vmatprep.subr.bf16.mxu1 %v5335_v56  ;;  %v5410_v55 = vld [vmem:[#allocation2 + $0x4c4] ss:$16 sps:$4 sm:$0xff]   ;;  %v5413_v56 = vld [vmem:[#allocation2 + $0x4cc] ss:$16 sps:$4 sm:$0xff]  }
  0x8c   :  { %1904 = vmatpush1.bf16.msra.mxu0 %v5330_v57  ;;  %2196 = vmatpush1.bf16.msra.mxu1 %v5333_v58  ;;  %v6128_v57 = vld [vmem:[%s6690_s0 + $0x10] sm:$0xff]  ;;  %v4392_v58 = vcombine.low %v87_v45, %v91_v47 }
  0x8d   :  { %1905 = vmatprep.subr.bf16.mxu0 %v5338_v59  ;;  %2197 = vmatprep.subr.bf16.mxu1 %v5341_v60  ;;  %v6133_v59 = vld [vmem:[%s6690_s0 + $0x30] sm:$0xff] }
  0x8e   :  { %v5408_v60 = vld [vmem:[#allocation2 + $0x4c0] ss:$16 sps:$4 sm:$0xff]   ;;  %v5482_v47 = vld [vmem:[#allocation2 + $0x644] ss:$16 sps:$4 sm:$0xff]  }
  0x8f   :  { %v5474_v45 = vld [vmem:[#allocation2 + $0x620] ss:$16 sps:$4 sm:$0xff]  }
  0x90   :  { %1906 = vmatpush1.bf16.msra.mxu0 %v5336_v61  ;;  %2198 = vmatpush1.bf16.msra.mxu1 %v5339_v62  ;;  %v5411_v61 = vld [vmem:[#allocation2 + $0x4c8] ss:$16 sps:$4 sm:$0xff]   ;;  %v5416_v62 = vld [vmem:[#allocation2 + $0x4e4] ss:$16 sps:$4 sm:$0xff]  }
  0x91   :  { %1907 = vmatprep.subr.bf16.mxu0 %v5344_v63  ;;  %2199 = vmatprep.subr.bf16.mxu1 %v5347_v0  ;;  %v5419_v63 = vld [vmem:[#allocation2 + $0x4ec] ss:$16 sps:$4 sm:$0xff]   ;;  %v4371_v0 = vcombine.high %v6128_v57, %v6133_v59 }
  0x94   :  { %1908 = vmatpush1.bf16.msra.mxu0 %v5342_v1  ;;  %2200 = vmatpush1.bf16.msra.mxu1 %v5345_v2  ;;  %v5414_v1 = vld [vmem:[#allocation2 + $0x4e0] ss:$16 sps:$4 sm:$0xff]   ;;  %v5417_v2 = vld [vmem:[#allocation2 + $0x4e8] ss:$16 sps:$4 sm:$0xff]  }
  0x95   :  { %1909 = vmatprep.subr.bf16.mxu0 %v5350_v3  ;;  %2201 = vmatprep.subr.bf16.mxu1 %v5353_v4  ;;  %v5422_v3 = vld [vmem:[#allocation2 + $0x504] ss:$16 sps:$4 sm:$0xff]   ;;  %v5425_v4 = vld [vmem:[#allocation2 + $0x50c] ss:$16 sps:$4 sm:$0xff]  }
  0x98   :  { %1910 = vmatpush1.bf16.msra.mxu0 %v5348_v5  ;;  %2202 = vmatpush1.bf16.msra.mxu1 %v5351_v6  ;;  %v5420_v5 = vld [vmem:[#allocation2 + $0x500] ss:$16 sps:$4 sm:$0xff]   ;;  %v5423_v6 = vld [vmem:[#allocation2 + $0x508] ss:$16 sps:$4 sm:$0xff]  }
  0x99   :  { %1911 = vmatprep.subr.bf16.mxu0 %v5356_v7  ;;  %2203 = vmatprep.subr.bf16.mxu1 %v5359_v8  ;;  %v5428_v7 = vld [vmem:[#allocation2 + $0x524] ss:$16 sps:$4 sm:$0xff]   ;;  %v5431_v8 = vld [vmem:[#allocation2 + $0x52c] ss:$16 sps:$4 sm:$0xff]  }
  0x9c   :  { %1912 = vmatpush1.bf16.msra.mxu0 %v5354_v9  ;;  %2204 = vmatpush1.bf16.msra.mxu1 %v5357_v10  ;;  %v5426_v9 = vld [vmem:[#allocation2 + $0x520] ss:$16 sps:$4 sm:$0xff]   ;;  %v5429_v10 = vld [vmem:[#allocation2 + $0x528] ss:$16 sps:$4 sm:$0xff]  }
  0x9d   :  { %1913 = vmatprep.subr.bf16.mxu0 %v5362_v11  ;;  %2205 = vmatprep.subr.bf16.mxu1 %v5365_v12  ;;  %v5434_v11 = vld [vmem:[#allocation2 + $0x544] ss:$16 sps:$4 sm:$0xff]   ;;  %v5437_v12 = vld [vmem:[#allocation2 + $0x54c] ss:$16 sps:$4 sm:$0xff]  }
  0xa0   :  { %1914 = vmatpush1.bf16.msra.mxu0 %v5360_v13  ;;  %2206 = vmatpush1.bf16.msra.mxu1 %v5363_v14  ;;  %v5432_v13 = vld [vmem:[#allocation2 + $0x540] ss:$16 sps:$4 sm:$0xff]   ;;  %v5435_v14 = vld [vmem:[#allocation2 + $0x548] ss:$16 sps:$4 sm:$0xff]  }
  0xa1   :  { %1915 = vmatprep.subr.bf16.mxu0 %v5368_v15  ;;  %2207 = vmatprep.subr.bf16.mxu1 %v5371_v16  ;;  %v5440_v15 = vld [vmem:[#allocation2 + $0x564] ss:$16 sps:$4 sm:$0xff]   ;;  %v5443_v16 = vld [vmem:[#allocation2 + $0x56c] ss:$16 sps:$4 sm:$0xff]  }
  0xa4   :  { %1916 = vmatpush1.bf16.msra.mxu0 %v5366_v17  ;;  %2208 = vmatpush1.bf16.msra.mxu1 %v5369_v18  ;;  %v5438_v17 = vld [vmem:[#allocation2 + $0x560] ss:$16 sps:$4 sm:$0xff]   ;;  %v5441_v18 = vld [vmem:[#allocation2 + $0x568] ss:$16 sps:$4 sm:$0xff]  }
  0xa5   :  { %1958 = vmatprep.subr.bf16.mxu0 %v5374_v19  ;;  %2250 = vmatprep.subr.bf16.mxu1 %v5377_v20  ;;  %v5446_v19 = vld [vmem:[#allocation2 + $0x584] ss:$16 sps:$4 sm:$0xff]   ;;  %v5449_v20 = vld [vmem:[#allocation2 + $0x58c] ss:$16 sps:$4 sm:$0xff]  }
  0xa7   :  { %1918 = vmatmul.mubr.bf16.vlgmr.msra.gmra.mrb[0].mxu0 %v4368_v22  ;;  %2210 = vmatmul.mubr.bf16.vlgmr.msra.gmra.mrb[0].mxu1 %v4368_v22  ;;  %v5447_v22 = vld [vmem:[#allocation2 + $0x588] ss:$16 sps:$4 sm:$0xff]  }
  0xa8   :  { %1959 = vmatpush1.bf16.msra.mxu0 %v5372_v21  ;;  %2251 = vmatpush1.bf16.msra.mxu1 %v5375_v23  ;;  %v5444_v21 = vld [vmem:[#allocation2 + $0x580] ss:$16 sps:$4 sm:$0xff]   ;;  %v5452_v23 = vld [vmem:[#allocation2 + $0x5a4] ss:$16 sps:$4 sm:$0xff]  }
  0xa9   :  { %1960 = vmatprep.subr.bf16.mxu0 %v5380_v26  ;;  %2252 = vmatprep.subr.bf16.mxu1 %v5383_v27  ;;  %v5453_v26 = vld [vmem:[#allocation2 + $0x5a8] ss:$16 sps:$4 sm:$0xff]   ;;  %v5458_v27 = vld [vmem:[#allocation2 + $0x5c4] ss:$16 sps:$4 sm:$0xff]  }
  0xaa   :  { %1927 = vmatprep.mubr.bf16.mxu0 %v4377_v28  ;;  %2219 = vmatprep.mubr.bf16.mxu1 %v4377_v28  ;;  %v5461_v28 = vld [vmem:[#allocation2 + $0x5cc] ss:$16 sps:$4 sm:$0xff]  }
  0xac   :  { %1961 = vmatpush1.bf16.msra.mxu0 %v5378_v29  ;;  %2253 = vmatpush1.bf16.msra.mxu1 %v5381_v30  ;;  %v5456_v29 = vld [vmem:[#allocation2 + $0x5c0] ss:$16 sps:$4 sm:$0xff]   ;;  %v5459_v30 = vld [vmem:[#allocation2 + $0x5c8] ss:$16 sps:$4 sm:$0xff]  }
  0xad   :  { %1962 = vmatprep.subr.bf16.mxu0 %v5386_v31  ;;  %2254 = vmatprep.subr.bf16.mxu1 %v5389_v32  ;;  %v5464_v31 = vld [vmem:[#allocation2 + $0x5e4] ss:$16 sps:$4 sm:$0xff]   ;;  %v5467_v32 = vld [vmem:[#allocation2 + $0x5ec] ss:$16 sps:$4 sm:$0xff]  }
  0xaf   :  { %1928 = vmatmul.mubr.bf16.gmra.mrb[4].mxu0 %v4376_v34  ;;  %2220 = vmatmul.mubr.bf16.gmra.mrb[4].mxu1 %v4376_v34  ;;  %v5465_v34 = vld [vmem:[#allocation2 + $0x5e8] ss:$16 sps:$4 sm:$0xff]  }
  0xb0   :  { %1963 = vmatpush1.bf16.msra.mxu0 %v5384_v36  ;;  %2255 = vmatpush1.bf16.msra.mxu1 %v5387_v37  ;;  %v5473_v36 = vld [vmem:[#allocation2 + $0x60c] ss:$16 sps:$4 sm:$0xff]   ;;  %v5468_v37 = vld [vmem:[#allocation2 + $0x600] ss:$16 sps:$4 sm:$0xff]  }
  0xb1   :  { %1964 = vmatprep.subr.bf16.mxu0 %v5392_v38  ;;  %2256 = vmatprep.subr.bf16.mxu1 %v5395_v39  ;;  %v5471_v38 = vld [vmem:[#allocation2 + $0x608] ss:$16 sps:$4 sm:$0xff]   ;;  %v4370_v39 = vcombine.low %v6128_v57, %v6133_v59  ;;  %v5486_v57 = vld [vmem:[#allocation2 + $0x660] ss:$16 sps:$4 sm:$0xff]   ;;  %v5494_v59 = vld [vmem:[#allocation2 + $0x684] ss:$16 sps:$4 sm:$0xff]  }
  0xb2   :  { %1937 = vmatprep.mubr.bf16.mxu0 %v4385_v40  ;;  %2229 = vmatprep.mubr.bf16.mxu1 %v4385_v40  ;;  %v72_v40 = vld [vmem:[%s6690_s0 + $0x50] sm:$0xff] }
  0xb4   :  { %1965 = vmatpush1.bf16.msra.mxu0 %v5390_v41  ;;  %2257 = vmatpush1.bf16.msra.mxu1 %v5393_v42  ;;  %v76_v41 = vld [vmem:[%s6690_s0 + $0x70] sm:$0xff] }
  0xb5   :  { %1966 = vmatprep.subr.bf16.mxu0 %v5398_v43  ;;  %2258 = vmatprep.subr.bf16.mxu1 %v5401_v44  ;;  %v5476_v42 = vld [vmem:[#allocation2 + $0x624] ss:$16 sps:$4 sm:$0xff]   ;;  %v5479_v43 = vld [vmem:[#allocation2 + $0x62c] ss:$16 sps:$4 sm:$0xff]   ;;  %v4379_v44 = vcombine.high %v72_v40, %v76_v41 }
  0xb7   :  { %1938 = vmatmul.mubr.bf16.gmra.mrb[8].mxu0 %v4384_v46  ;;  %2230 = vmatmul.mubr.bf16.gmra.mrb[8].mxu1 %v4384_v46  ;;  %v5477_v46 = vld [vmem:[#allocation2 + $0x628] ss:$16 sps:$4 sm:$0xff]  }
  0xb8   :  { %1967 = vmatpush1.bf16.msra.mxu0 %v5396_v48  ;;  %2259 = vmatpush1.bf16.msra.mxu1 %v5399_v49  ;;  %v5485_v48 = vld [vmem:[#allocation2 + $0x64c] ss:$16 sps:$4 sm:$0xff]   ;;  %v5480_v49 = vld [vmem:[#allocation2 + $0x640] ss:$16 sps:$4 sm:$0xff]  }
  0xb9   :  { %1968 = vmatprep.subr.bf16.mxu0 %v5404_v50  ;;  %2260 = vmatprep.subr.bf16.mxu1 %v5407_v51  ;;  %v5483_v50 = vld [vmem:[#allocation2 + $0x648] ss:$16 sps:$4 sm:$0xff]   ;;  %v4378_v51 = vcombine.low %v72_v40, %v76_v41  ;;  %v5551_v40 = vld [vmem:[#allocation2 + $0x7ac] ss:$16 sps:$4 sm:$0xff]   ;;  %v5546_v41 = vld [vmem:[#allocation2 + $0x7a0] ss:$16 sps:$4 sm:$0xff]  }
  0xba   :  { %1947 = vmatprep.mubr.bf16.mxu0 %v4393_v52  ;;  %2239 = vmatprep.mubr.bf16.mxu1 %v4393_v52  ;;  %v80_v52 = vld [vmem:[%s6690_s0 + $0x90] sm:$0xff] }
  0xbc   :  { %1969 = vmatpush1.bf16.msra.mxu0 %v5402_v53  ;;  %2261 = vmatpush1.bf16.msra.mxu1 %v5405_v54  ;;  %v84_v53 = vld [vmem:[%s6690_s0 + $0xb0] sm:$0xff] }
  0xbd   :  { %1970 = vmatprep.subr.bf16.mxu0 %v5410_v55  ;;  %2262 = vmatprep.subr.bf16.mxu1 %v5413_v56  ;;  %v5488_v54 = vld [vmem:[#allocation2 + $0x664] ss:$16 sps:$4 sm:$0xff]   ;;  %v5491_v55 = vld [vmem:[#allocation2 + $0x66c] ss:$16 sps:$4 sm:$0xff]   ;;  %v4387_v56 = vcombine.high %v80_v52, %v84_v53 }
  0xbf   :  { %1948 = vmatmul.mubr.bf16.gmra.mrb[12].mxu0 %v4392_v58  ;;  %2240 = vmatmul.mubr.bf16.gmra.mrb[12].mxu1 %v4392_v58  ;;  %v5489_v58 = vld [vmem:[#allocation2 + $0x668] ss:$16 sps:$4 sm:$0xff]  }
  0xc0   :  { %1971 = vmatpush1.bf16.msra.mxu0 %v5408_v60  ;;  %2263 = vmatpush1.bf16.msra.mxu1 %v5411_v61  ;;  %v5497_v60 = vld [vmem:[#allocation2 + $0x68c] ss:$16 sps:$4 sm:$0xff]   ;;  %v5492_v61 = vld [vmem:[#allocation2 + $0x680] ss:$16 sps:$4 sm:$0xff]  }
  0xc1   :  { %1972 = vmatprep.subr.bf16.mxu0 %v5416_v62  ;;  %2264 = vmatprep.subr.bf16.mxu1 %v5419_v63  ;;  %v5495_v62 = vld [vmem:[#allocation2 + $0x688] ss:$16 sps:$4 sm:$0xff]   ;;  %v4386_v63 = vcombine.low %v80_v52, %v84_v53  ;;  %v5566_v53 = vld [vmem:[#allocation5 + $0x4] ss:$16 sps:$4 sm:$0xff]  }
  0xc2   :  { %1990 = vmatprep.mubr.bf16.mxu0 %v4371_v0  ;;  %2282 = vmatprep.mubr.bf16.mxu1 %v4371_v0  ;;  %v88_v0 = vld [vmem:[%s6690_s0 + $0xd0] sm:$0xff]  ;;  %v77_v52 = vld [vmem:[%s6690_s0 + $0x78] sm:$0xff] }
  0xc4   :  { %1973 = vmatpush1.bf16.msra.mxu0 %v5414_v1  ;;  %2265 = vmatpush1.bf16.msra.mxu1 %v5417_v2  ;;  %v92_v1 = vld [vmem:[%s6690_s0 + $0xf0] sm:$0xff] }
  0xc5   :  { %1974 = vmatprep.subr.bf16.mxu0 %v5422_v3  ;;  %2266 = vmatprep.subr.bf16.mxu1 %v5425_v4  ;;  %v5500_v2 = vld [vmem:[#allocation2 + $0x6a4] ss:$16 sps:$4 sm:$0xff]   ;;  %v5503_v3 = vld [vmem:[#allocation2 + $0x6ac] ss:$16 sps:$4 sm:$0xff]   ;;  %v4395_v4 = vcombine.high %v88_v0, %v92_v1 }
  0xc8   :  { %1975 = vmatpush1.bf16.msra.mxu0 %v5420_v5  ;;  %2267 = vmatpush1.bf16.msra.mxu1 %v5423_v6  ;;  %v5498_v5 = vld [vmem:[#allocation2 + $0x6a0] ss:$16 sps:$4 sm:$0xff]   ;;  %v5501_v6 = vld [vmem:[#allocation2 + $0x6a8] ss:$16 sps:$4 sm:$0xff]  }
  0xc9   :  { %1976 = vmatprep.subr.bf16.mxu0 %v5428_v7  ;;  %2268 = vmatprep.subr.bf16.mxu1 %v5431_v8  ;;  %v5506_v7 = vld [vmem:[#allocation2 + $0x6c4] ss:$16 sps:$4 sm:$0xff]   ;;  %v5509_v8 = vld [vmem:[#allocation2 + $0x6cc] ss:$16 sps:$4 sm:$0xff]  }
  0xcc   :  { %1977 = vmatpush1.bf16.msra.mxu0 %v5426_v9  ;;  %2269 = vmatpush1.bf16.msra.mxu1 %v5429_v10  ;;  %v5504_v9 = vld [vmem:[#allocation2 + $0x6c0] ss:$16 sps:$4 sm:$0xff]   ;;  %v5507_v10 = vld [vmem:[#allocation2 + $0x6c8] ss:$16 sps:$4 sm:$0xff]  }
  0xcd   :  { %1978 = vmatprep.subr.bf16.mxu0 %v5434_v11  ;;  %2270 = vmatprep.subr.bf16.mxu1 %v5437_v12  ;;  %v4394_v11 = vcombine.low %v88_v0, %v92_v1  ;;  %v6160_v12 = vld [vmem:[%s6690_s0 + $0x18] sm:$0xff]  ;;  %v5578_v1 = vld [vmem:[#allocation5 + $0x44] ss:$16 sps:$4 sm:$0xff]  }
  0xce   :  { %v5573_v0 = vld [vmem:[#allocation5 + $0x28] ss:$16 sps:$4 sm:$0xff]  }
  0xd0   :  { %1979 = vmatpush1.bf16.msra.mxu0 %v5432_v13  ;;  %2271 = vmatpush1.bf16.msra.mxu1 %v5435_v14  ;;  %v6165_v13 = vld [vmem:[%s6690_s0 + $0x38] sm:$0xff]  ;;  %v5512_v14 = vld [vmem:[#allocation2 + $0x6e4] ss:$16 sps:$4 sm:$0xff]  }
  0xd1   :  { %1980 = vmatprep.subr.bf16.mxu0 %v5440_v15  ;;  %2272 = vmatprep.subr.bf16.mxu1 %v5443_v16  ;;  %v5515_v15 = vld [vmem:[#allocation2 + $0x6ec] ss:$16 sps:$4 sm:$0xff]   ;;  %v5510_v16 = vld [vmem:[#allocation2 + $0x6e0] ss:$16 sps:$4 sm:$0xff]  }
  0xd4   :  { %1981 = vmatpush1.bf16.msra.mxu0 %v5438_v17  ;;  %2273 = vmatpush1.bf16.msra.mxu1 %v5441_v18  ;;  %v5513_v17 = vld [vmem:[#allocation2 + $0x6e8] ss:$16 sps:$4 sm:$0xff]   ;;  %v4373_v18 = vcombine.high %v6160_v12, %v6165_v13 }
  0xd5   :  { %1982 = vmatprep.subr.bf16.mxu0 %v5446_v19  ;;  %2274 = vmatprep.subr.bf16.mxu1 %v5449_v20  ;;  %v5518_v19 = vld [vmem:[#allocation2 + $0x704] ss:$16 sps:$4 sm:$0xff]   ;;  %v5521_v20 = vld [vmem:[#allocation2 + $0x70c] ss:$16 sps:$4 sm:$0xff]  }
  0xd8   :  { %1983 = vmatpush1.bf16.msra.mxu0 %v5444_v21  ;;  %2275 = vmatpush1.bf16.msra.mxu1 %v5447_v22  ;;  %v5516_v21 = vld [vmem:[#allocation2 + $0x700] ss:$16 sps:$4 sm:$0xff]   ;;  %v5519_v22 = vld [vmem:[#allocation2 + $0x708] ss:$16 sps:$4 sm:$0xff]  }
  0xd9   :  { %1984 = vmatprep.subr.bf16.mxu0 %v5452_v23  ;;  %2276 = vmatprep.subr.bf16.mxu1 %v5455_v24  ;;  %v5524_v23 = vld [vmem:[#allocation2 + $0x724] ss:$16 sps:$4 sm:$0xff]   ;;  %v5527_v24 = vld [vmem:[#allocation2 + $0x72c] ss:$16 sps:$4 sm:$0xff]  }
  0xdc   :  { %1985 = vmatpush1.bf16.msra.mxu0 %v5450_v25  ;;  %2277 = vmatpush1.bf16.msra.mxu1 %v5453_v26  ;;  %v5522_v25 = vld [vmem:[#allocation2 + $0x720] ss:$16 sps:$4 sm:$0xff]   ;;  %v5525_v26 = vld [vmem:[#allocation2 + $0x728] ss:$16 sps:$4 sm:$0xff]  }
  0xdd   :  { %1986 = vmatprep.subr.bf16.mxu0 %v5458_v27  ;;  %2278 = vmatprep.subr.bf16.mxu1 %v5461_v28  ;;  %v5530_v27 = vld [vmem:[#allocation2 + $0x744] ss:$16 sps:$4 sm:$0xff]   ;;  %v5533_v28 = vld [vmem:[#allocation2 + $0x74c] ss:$16 sps:$4 sm:$0xff]  }
  0xe0   :  { %1987 = vmatpush1.bf16.msra.mxu0 %v5456_v29  ;;  %2279 = vmatpush1.bf16.msra.mxu1 %v5459_v30  ;;  %v5528_v29 = vld [vmem:[#allocation2 + $0x740] ss:$16 sps:$4 sm:$0xff]   ;;  %v5531_v30 = vld [vmem:[#allocation2 + $0x748] ss:$16 sps:$4 sm:$0xff]  }
  0xe1   :  { %1988 = vmatprep.subr.bf16.mxu0 %v5464_v31  ;;  %2280 = vmatprep.subr.bf16.mxu1 %v5467_v32  ;;  %v5536_v31 = vld [vmem:[#allocation2 + $0x764] ss:$16 sps:$4 sm:$0xff]   ;;  %v5539_v32 = vld [vmem:[#allocation2 + $0x76c] ss:$16 sps:$4 sm:$0xff]  }
  0xe4   :  { %1989 = vmatpush1.bf16.msra.mxu0 %v5462_v33  ;;  %2281 = vmatpush1.bf16.msra.mxu1 %v5465_v34  ;;  %v5534_v33 = vld [vmem:[#allocation2 + $0x760] ss:$16 sps:$4 sm:$0xff]   ;;  %v5537_v34 = vld [vmem:[#allocation2 + $0x768] ss:$16 sps:$4 sm:$0xff]  }
  0xe5   :  { %2031 = vmatprep.subr.bf16.mxu0 %v5470_v35  ;;  %2323 = vmatprep.subr.bf16.mxu1 %v5473_v36  ;;  %v5542_v35 = vld [vmem:[#allocation2 + $0x784] ss:$16 sps:$4 sm:$0xff]   ;;  %v5545_v36 = vld [vmem:[#allocation2 + $0x78c] ss:$16 sps:$4 sm:$0xff]  }
  0xe7   :  { %1991 = vmatmul.mubr.bf16.vlgmr.msra.gmra.mrb[0].mxu0 %v4370_v39  ;;  %2283 = vmatmul.mubr.bf16.vlgmr.msra.gmra.mrb[0].mxu1 %v4370_v39  ;;  %v5548_v39 = vld [vmem:[#allocation2 + $0x7a4] ss:$16 sps:$4 sm:$0xff]  }
  0xe8   :  { %2032 = vmatpush1.bf16.msra.mxu0 %v5468_v37  ;;  %2324 = vmatpush1.bf16.msra.mxu1 %v5471_v38  ;;  %v5540_v37 = vld [vmem:[#allocation2 + $0x780] ss:$16 sps:$4 sm:$0xff]   ;;  %v5543_v38 = vld [vmem:[#allocation2 + $0x788] ss:$16 sps:$4 sm:$0xff]  }
  0xe9   :  { %2033 = vmatprep.subr.bf16.mxu0 %v5476_v42  ;;  %2325 = vmatprep.subr.bf16.mxu1 %v5479_v43  ;;  %v5549_v42 = vld [vmem:[#allocation2 + $0x7a8] ss:$16 sps:$4 sm:$0xff]   ;;  %v5554_v43 = vld [vmem:[#allocation2 + $0x7c4] ss:$16 sps:$4 sm:$0xff]  }
  0xea   :  { %2000 = vmatprep.mubr.bf16.mxu0 %v4379_v44  ;;  %2292 = vmatprep.mubr.bf16.mxu1 %v4379_v44  ;;  %v5557_v44 = vld [vmem:[#allocation2 + $0x7cc] ss:$16 sps:$4 sm:$0xff]  }
  0xec   :  { %2034 = vmatpush1.bf16.msra.mxu0 %v5474_v45  ;;  %2326 = vmatpush1.bf16.msra.mxu1 %v5477_v46  ;;  %v5552_v45 = vld [vmem:[#allocation2 + $0x7c0] ss:$16 sps:$4 sm:$0xff]   ;;  %v5555_v46 = vld [vmem:[#allocation2 + $0x7c8] ss:$16 sps:$4 sm:$0xff]  }
  0xed   :  { %2035 = vmatprep.subr.bf16.mxu0 %v5482_v47  ;;  %2327 = vmatprep.subr.bf16.mxu1 %v5485_v48  ;;  %v5560_v47 = vld [vmem:[#allocation2 + $0x7e4] ss:$16 sps:$4 sm:$0xff]   ;;  %v5563_v48 = vld [vmem:[#allocation2 + $0x7ec] ss:$16 sps:$4 sm:$0xff]  }
  0xef   :  { %2001 = vmatmul.mubr.bf16.gmra.mrb[4].mxu0 %v4378_v51  ;;  %2293 = vmatmul.mubr.bf16.gmra.mrb[4].mxu1 %v4378_v51  ;;  %v73_v51 = vld [vmem:[%s6690_s0 + $0x58] sm:$0xff] }
  0xf0   :  { %2036 = vmatpush1.bf16.msra.mxu0 %v5480_v49  ;;  %2328 = vmatpush1.bf16.msra.mxu1 %v5483_v50  ;;  %v5558_v49 = vld [vmem:[#allocation2 + $0x7e0] ss:$16 sps:$4 sm:$0xff]   ;;  %v5561_v50 = vld [vmem:[#allocation2 + $0x7e8] ss:$16 sps:$4 sm:$0xff]  }
  0xf1   :  { %2037 = vmatprep.subr.bf16.mxu0 %v5488_v54  ;;  %2329 = vmatprep.subr.bf16.mxu1 %v5491_v55  ;;  %v5569_v54 = vld [vmem:[#allocation5 + $0xc] ss:$16 sps:$4 sm:$0xff]   ;;  %v4372_v55 = vcombine.low %v6160_v12, %v6165_v13  ;;  %v5585_v12 = vld [vmem:[#allocation5 + $0x68] ss:$16 sps:$4 sm:$0xff]   ;;  %v5590_v13 = vld [vmem:[#allocation5 + $0x84] ss:$16 sps:$4 sm:$0xff]  }
  0xf2   :  { %2010 = vmatprep.mubr.bf16.mxu0 %v4387_v56  ;;  %2302 = vmatprep.mubr.bf16.mxu1 %v4387_v56  ;;  %v5564_v56 = vld [vmem:[#allocation5] ss:$16 sps:$4 sm:$0xff]  }
  0xf4   :  { %2038 = vmatpush1.bf16.msra.mxu0 %v5486_v57  ;;  %2330 = vmatpush1.bf16.msra.mxu1 %v5489_v58  ;;  %v5567_v57 = vld [vmem:[#allocation5 + $0x8] ss:$16 sps:$4 sm:$0xff]   ;;  %v4381_v58 = vcombine.high %v73_v51, %v77_v52 }
  0xf5   :  { %2039 = vmatprep.subr.bf16.mxu0 %v5494_v59  ;;  %2331 = vmatprep.subr.bf16.mxu1 %v5497_v60  ;;  %v5572_v59 = vld [vmem:[#allocation5 + $0x24] ss:$16 sps:$4 sm:$0xff]   ;;  %v5575_v60 = vld [vmem:[#allocation5 + $0x2c] ss:$16 sps:$4 sm:$0xff]  }
  0xf7   :  { %2011 = vmatmul.mubr.bf16.gmra.mrb[8].mxu0 %v4386_v63  ;;  %2303 = vmatmul.mubr.bf16.gmra.mrb[8].mxu1 %v4386_v63  ;;  %v5570_v63 = vld [vmem:[#allocation5 + $0x20] ss:$16 sps:$4 sm:$0xff]  }
  0xf8   :  { %2040 = vmatpush1.bf16.msra.mxu0 %v5492_v61  ;;  %2332 = vmatpush1.bf16.msra.mxu1 %v5495_v62  ;;  %v81_v61 = vld [vmem:[%s6690_s0 + $0x98] sm:$0xff] }
  0xf9   :  { %2041 = vmatprep.subr.bf16.mxu0 %v5500_v2  ;;  %2333 = vmatprep.subr.bf16.mxu1 %v5503_v3  ;;  %v85_v62 = vld [vmem:[%s6690_s0 + $0xb8] sm:$0xff]  ;;  %v4380_v3 = vcombine.low %v73_v51, %v77_v52  ;;  %v5644_v52 = vld [vmem:[#allocation5 + $0x1a4] ss:$16 sps:$4 sm:$0xff]  }
  0xfa   :  { %2020 = vmatprep.mubr.bf16.mxu0 %v4395_v4  ;;  %2312 = vmatprep.mubr.bf16.mxu1 %v4395_v4  ;;  %v5581_v2 = vld [vmem:[#allocation5 + $0x4c] ss:$16 sps:$4 sm:$0xff]   ;;  %v5576_v4 = vld [vmem:[#allocation5 + $0x40] ss:$16 sps:$4 sm:$0xff]   ;;  %v5639_v51 = vld [vmem:[#allocation5 + $0x188] ss:$16 sps:$4 sm:$0xff]  }
  0xfc   :  { %2042 = vmatpush1.bf16.msra.mxu0 %v5498_v5  ;;  %2334 = vmatpush1.bf16.msra.mxu1 %v5501_v6  ;;  %v5579_v5 = vld [vmem:[#allocation5 + $0x48] ss:$16 sps:$4 sm:$0xff]   ;;  %v4389_v6 = vcombine.high %v81_v61, %v85_v62 }
  0xfd   :  { %2043 = vmatprep.subr.bf16.mxu0 %v5506_v7  ;;  %2335 = vmatprep.subr.bf16.mxu1 %v5509_v8  ;;  %v5584_v7 = vld [vmem:[#allocation5 + $0x64] ss:$16 sps:$4 sm:$0xff]   ;;  %v5587_v8 = vld [vmem:[#allocation5 + $0x6c] ss:$16 sps:$4 sm:$0xff]  }
  0xff   :  { %2021 = vmatmul.mubr.bf16.gmra.mrb[12].mxu0 %v4394_v11  ;;  %2313 = vmatmul.mubr.bf16.gmra.mrb[12].mxu1 %v4394_v11  ;;  %v5582_v11 = vld [vmem:[#allocation5 + $0x60] ss:$16 sps:$4 sm:$0xff]  }
 0x100   :  { %2044 = vmatpush1.bf16.msra.mxu0 %v5504_v9  ;;  %2336 = vmatpush1.bf16.msra.mxu1 %v5507_v10  ;;  %v89_v9 = vld [vmem:[%s6690_s0 + $0xd8] sm:$0xff] }
 0x101   :  { %2045 = vmatprep.subr.bf16.mxu0 %v5512_v14  ;;  %2337 = vmatprep.subr.bf16.mxu1 %v5515_v15  ;;  %v93_v10 = vld [vmem:[%s6690_s0 + $0xf8] sm:$0xff]  ;;  %v4388_v15 = vcombine.low %v81_v61, %v85_v62  ;;  %v5654_v62 = vld [vmem:[#allocation5 + $0x1e0] ss:$16 sps:$4 sm:$0xff]   ;;  %s4356_s0 = sshll.u32 %s5994_s29, 4  ;;  %s4357_s0 = int_to_ptr.vmem [resolvable:$true] %s4356_s0 }
 0x102   :  { %2063 = vmatprep.mubr.bf16.mxu0 %v4373_v18  ;;  %2355 = vmatprep.mubr.bf16.mxu1 %v4373_v18  ;;  %v5593_v14 = vld [vmem:[#allocation5 + $0x8c] ss:$16 sps:$4 sm:$0xff]   ;;  %v4397_v18 = vcombine.high %v89_v9, %v93_v10  ;;  %s5962_s30 = scalar_lea.vmem %s4357_s0, 16  ;;  %p5967_p3 = scmp.lt.s32.totalorder %s4357_s0, %s4357_s0 }
 0x103   :  { %v5659_v61 = vld [vmem:[#allocation5 + $0x1ec] ss:$16 sps:$4 sm:$0xff]   ;;  %p5963_p2 = scmp.ne.s32.totalorder %s4357_s0, %s5962_s30 }
 0x104   :  { %2046 = vmatpush1.bf16.msra.mxu0 %v5510_v16  ;;  %2338 = vmatpush1.bf16.msra.mxu1 %v5513_v17  ;;  %v5588_v16 = vld [vmem:[#allocation5 + $0x80] ss:$16 sps:$4 sm:$0xff]   ;;  %v5591_v17 = vld [vmem:[#allocation5 + $0x88] ss:$16 sps:$4 sm:$0xff]  }
 0x105   :  { %2047 = vmatprep.subr.bf16.mxu0 %v5518_v19  ;;  %2339 = vmatprep.subr.bf16.mxu1 %v5521_v20  ;;  %v5596_v19 = vld [vmem:[#allocation5 + $0xa4] ss:$16 sps:$4 sm:$0xff]   ;;  %v5599_v20 = vld [vmem:[#allocation5 + $0xac] ss:$16 sps:$4 sm:$0xff]  }
 0x108   :  { %2048 = vmatpush1.bf16.msra.mxu0 %v5516_v21  ;;  %2340 = vmatpush1.bf16.msra.mxu1 %v5519_v22  ;;  %v5594_v21 = vld [vmem:[#allocation5 + $0xa0] ss:$16 sps:$4 sm:$0xff]   ;;  %v5597_v22 = vld [vmem:[#allocation5 + $0xa8] ss:$16 sps:$4 sm:$0xff]  }
 0x109   :  { %2049 = vmatprep.subr.bf16.mxu0 %v5524_v23  ;;  %2341 = vmatprep.subr.bf16.mxu1 %v5527_v24  ;;  %v5602_v23 = vld [vmem:[#allocation5 + $0xc4] ss:$16 sps:$4 sm:$0xff]   ;;  %v5605_v24 = vld [vmem:[#allocation5 + $0xcc] ss:$16 sps:$4 sm:$0xff]  }
 0x10c   :  { %2050 = vmatpush1.bf16.msra.mxu0 %v5522_v25  ;;  %2342 = vmatpush1.bf16.msra.mxu1 %v5525_v26  ;;  %v4396_v25 = vcombine.low %v89_v9, %v93_v10  ;;  %v5600_v26 = vld [vmem:[#allocation5 + $0xc0] ss:$16 sps:$4 sm:$0xff]  }
 0x10d   :  { %2051 = vmatprep.subr.bf16.mxu0 %v5530_v27  ;;  %2343 = vmatprep.subr.bf16.mxu1 %v5533_v28  ;;  %v5603_v27 = vld [vmem:[#allocation5 + $0xc8] ss:$16 sps:$4 sm:$0xff]   ;;  %v5608_v28 = vld [vmem:[#allocation5 + $0xe4] ss:$16 sps:$4 sm:$0xff]  }
 0x110   :  { %2052 = vmatpush1.bf16.msra.mxu0 %v5528_v29  ;;  %2344 = vmatpush1.bf16.msra.mxu1 %v5531_v30  ;;  %v5611_v29 = vld [vmem:[#allocation5 + $0xec] ss:$16 sps:$4 sm:$0xff]   ;;  %v5606_v30 = vld [vmem:[#allocation5 + $0xe0] ss:$16 sps:$4 sm:$0xff]  }
 0x111   :  { %2053 = vmatprep.subr.bf16.mxu0 %v5536_v31  ;;  %2345 = vmatprep.subr.bf16.mxu1 %v5539_v32  ;;  %v5609_v31 = vld [vmem:[#allocation5 + $0xe8] ss:$16 sps:$4 sm:$0xff]   ;;  %v5614_v32 = vld [vmem:[#allocation5 + $0x104] ss:$16 sps:$4 sm:$0xff]  }
 0x114   :  { %2054 = vmatpush1.bf16.msra.mxu0 %v5534_v33  ;;  %2346 = vmatpush1.bf16.msra.mxu1 %v5537_v34  ;;  %v5617_v33 = vld [vmem:[#allocation5 + $0x10c] ss:$16 sps:$4 sm:$0xff]   ;;  %v5612_v34 = vld [vmem:[#allocation5 + $0x100] ss:$16 sps:$4 sm:$0xff]  }
 0x115   :  { %2055 = vmatprep.subr.bf16.mxu0 %v5542_v35  ;;  %2347 = vmatprep.subr.bf16.mxu1 %v5545_v36  ;;  %v5615_v35 = vld [vmem:[#allocation5 + $0x108] ss:$16 sps:$4 sm:$0xff]   ;;  %v5620_v36 = vld [vmem:[#allocation5 + $0x124] ss:$16 sps:$4 sm:$0xff]  }
 0x118   :  { %2056 = vmatpush1.bf16.msra.mxu0 %v5540_v37  ;;  %2348 = vmatpush1.bf16.msra.mxu1 %v5543_v38  ;;  %v5623_v37 = vld [vmem:[#allocation5 + $0x12c] ss:$16 sps:$4 sm:$0xff]   ;;  %v5618_v38 = vld [vmem:[#allocation5 + $0x120] ss:$16 sps:$4 sm:$0xff]  }
 0x119   :  { %2057 = vmatprep.subr.bf16.mxu0 %v5548_v39  ;;  %2349 = vmatprep.subr.bf16.mxu1 %v5551_v40  ;;  %v5621_v39 = vld [vmem:[#allocation5 + $0x128] ss:$16 sps:$4 sm:$0xff]   ;;  %v5626_v40 = vld [vmem:[#allocation5 + $0x144] ss:$16 sps:$4 sm:$0xff]  }
 0x11c   :  { %2058 = vmatpush1.bf16.msra.mxu0 %v5546_v41  ;;  %2350 = vmatpush1.bf16.msra.mxu1 %v5549_v42  ;;  %v5629_v41 = vld [vmem:[#allocation5 + $0x14c] ss:$16 sps:$4 sm:$0xff]   ;;  %v5624_v42 = vld [vmem:[#allocation5 + $0x140] ss:$16 sps:$4 sm:$0xff]  }
 0x11d   :  { %2059 = vmatprep.subr.bf16.mxu0 %v5554_v43  ;;  %2351 = vmatprep.subr.bf16.mxu1 %v5557_v44  ;;  %v5627_v43 = vld [vmem:[#allocation5 + $0x148] ss:$16 sps:$4 sm:$0xff]   ;;  %v5632_v44 = vld [vmem:[#allocation5 + $0x164] ss:$16 sps:$4 sm:$0xff]  }
 0x120   :  { %2060 = vmatpush1.bf16.msra.mxu0 %v5552_v45  ;;  %2352 = vmatpush1.bf16.msra.mxu1 %v5555_v46  ;;  %v5635_v45 = vld [vmem:[#allocation5 + $0x16c] ss:$16 sps:$4 sm:$0xff]   ;;  %v5630_v46 = vld [vmem:[#allocation5 + $0x160] ss:$16 sps:$4 sm:$0xff]  }
 0x121   :  { %2061 = vmatprep.subr.bf16.mxu0 %v5560_v47  ;;  %2353 = vmatprep.subr.bf16.mxu1 %v5563_v48  ;;  %v5633_v47 = vld [vmem:[#allocation5 + $0x168] ss:$16 sps:$4 sm:$0xff]   ;;  %v5638_v48 = vld [vmem:[#allocation5 + $0x184] ss:$16 sps:$4 sm:$0xff]  }
 0x124   :  { %2062 = vmatpush1.bf16.msra.mxu0 %v5558_v49  ;;  %2354 = vmatpush1.bf16.msra.mxu1 %v5561_v50  ;;  %v5641_v49 = vld [vmem:[#allocation5 + $0x18c] ss:$16 sps:$4 sm:$0xff]   ;;  %v5636_v50 = vld [vmem:[#allocation5 + $0x180] ss:$16 sps:$4 sm:$0xff]  }
 0x125   :  { %3234 = vmatprep.subr.bf16.mxu0 %v5566_v53  ;;  %3380 = vmatprep.subr.bf16.mxu1 %v5569_v54  ;;  %v5647_v53 = vld [vmem:[#allocation5 + $0x1ac] ss:$16 sps:$4 sm:$0xff]   ;;  %v5642_v54 = vld [vmem:[#allocation5 + $0x1a0] ss:$16 sps:$4 sm:$0xff]  }
 0x127   :  { %2064 = vmatmul.mubr.bf16.vlgmr.msra.gmra.mrb[0].mxu0 %v4372_v55  ;;  %2356 = vmatmul.mubr.bf16.vlgmr.msra.gmra.mrb[0].mxu1 %v4372_v55  ;;  %v5645_v55 = vld [vmem:[#allocation5 + $0x1a8] ss:$16 sps:$4 sm:$0xff]  }
 0x128   :  { %2073 = vmatprep.mubr.bf16.mxu0 %v4381_v58  ;;  %2365 = vmatprep.mubr.bf16.mxu1 %v4381_v58  ;;  %v5648_v58 = vld [vmem:[#allocation5 + $0x1c0] ss:$16 sps:$4 sm:$0xff]  }
 0x129   :  { %3235 = vmatpush1.bf16.msra.mxu0 %v5564_v56  ;;  %3381 = vmatpush1.bf16.msra.mxu1 %v5567_v57  ;;  %v5650_v56 = vld [vmem:[#allocation5 + $0x1c4] ss:$16 sps:$4 sm:$0xff]   ;;  %v5653_v57 = vld [vmem:[#allocation5 + $0x1cc] ss:$16 sps:$4 sm:$0xff]  }
 0x12a   :  { %3236 = vmatprep.subr.bf16.mxu0 %v5572_v59  ;;  %3382 = vmatprep.subr.bf16.mxu1 %v5575_v60  ;;  %v5651_v59 = vld [vmem:[#allocation5 + $0x1c8] ss:$16 sps:$4 sm:$0xff]   ;;  %v5656_v60 = vld [vmem:[#allocation5 + $0x1e4] ss:$16 sps:$4 sm:$0xff]  }
 0x12d   :  { %3237 = vmatpush1.bf16.msra.mxu0 %v5570_v63  ;;  %3383 = vmatpush1.bf16.msra.mxu1 %v5573_v0  ;;  %v5657_v63 = vld [vmem:[#allocation5 + $0x1e8] ss:$16 sps:$4 sm:$0xff]   ;;  %v5662_v0 = vld [vmem:[#allocation5 + $0x204] ss:$16 sps:$4 sm:$0xff]  }
 0x12e   :  { %3238 = vmatprep.subr.bf16.mxu0 %v5578_v1  ;;  %3384 = vmatprep.subr.bf16.mxu1 %v5581_v2  ;;  %v5665_v1 = vld [vmem:[#allocation5 + $0x20c] ss:$16 sps:$4 sm:$0xff]   ;;  %v352_v2 = vlaneseq }
 0x12f   :  { %2074 = vmatmul.mubr.bf16.gmra.mrb[4].mxu0 %v4380_v3  ;;  %2366 = vmatmul.mubr.bf16.gmra.mrb[4].mxu1 %v4380_v3 }
 0x130   :  { %2083 = vmatprep.mubr.bf16.mxu0 %v4389_v6  ;;  %2375 = vmatprep.mubr.bf16.mxu1 %v4389_v6  ;;  %v6189_v3 = vshrl.u32 %v352_v2, 7  ;;  %v350_v6 = vld [vmem:[%s6692_s2] sm:$0xf]  ;;  %s5966_s2 = scalar_lea.vmem %s4357_s0, 32 }
 0x131   :  { %3239 = vmatpush1.bf16.msra.mxu0 %v5576_v4  ;;  %3385 = vmatpush1.bf16.msra.mxu1 %v5579_v5  ;;  %p5968_p4 = scmp.lt.s32.totalorder %s5966_s2, %s5962_s30 }
 0x132   :  { %3240 = vmatprep.subr.bf16.mxu0 %v5584_v7  ;;  %3386 = vmatprep.subr.bf16.mxu1 %v5587_v8  ;;  %v354_v4 = vsub.s32 0, %v6189_v3  ;;  %v362_v5 = vsub.s32 2, %v6189_v3  ;;  %v358_v7 = vsub.s32 1, %v6189_v3  ;;  %v366_v8 = vsub.s32 3, %v6189_v3 }
 0x133   :  { %p5969_p5 = por %p5968_p4, %p5967_p3 }
 0x134   :  { %v6200_v9 = vrot.slane %v350_v6, %v354_v4  ;;  %v6204_v10 = vrot.slane %v350_v6, %v362_v5 }
 0x135   :  { %3241 = vmatpush1.bf16.msra.mxu0 %v5582_v11  ;;  %3387 = vmatpush1.bf16.msra.mxu1 %v5585_v12  ;;  %v6208_v11 = vrot.slane %v350_v6, %v358_v7  ;;  %v6212_v12 = vrot.slane %v350_v6, %v366_v8  ;;  %p5970_p6 = pnand %p5969_p5, %p5963_p2 }
 0x136   :  { %3242 = vmatprep.subr.bf16.mxu0 %v5590_v13  ;;  %3388 = vmatprep.subr.bf16.mxu1 %v5593_v14 }
 0x137   :  { %2084 = vmatmul.mubr.bf16.gmra.mrb[8].mxu0 %v4388_v15  ;;  %2376 = vmatmul.mubr.bf16.gmra.mrb[8].mxu1 %v4388_v15 }
 0x138   :  { %2093 = vmatprep.mubr.bf16.mxu0 %v4397_v18  ;;  %2385 = vmatprep.mubr.bf16.mxu1 %v4397_v18 }
 0x139   :  { %3243 = vmatpush1.bf16.msra.mxu0 %v5588_v16  ;;  %3389 = vmatpush1.bf16.msra.mxu1 %v5591_v17 }
 0x13a   :  { %3244 = vmatprep.subr.bf16.mxu0 %v5596_v19  ;;  %3390 = vmatprep.subr.bf16.mxu1 %v5599_v20 }
 0x13d   :  { %3245 = vmatpush1.bf16.msra.mxu0 %v5594_v21  ;;  %3391 = vmatpush1.bf16.msra.mxu1 %v5597_v22 }
 0x13e   :  { %3246 = vmatprep.subr.bf16.mxu0 %v5602_v23  ;;  %3392 = vmatprep.subr.bf16.mxu1 %v5605_v24 }
 0x13f   :  { %2094 = vmatmul.mubr.bf16.gmra.mrb[12].mxu0 %v4396_v25  ;;  %2386 = vmatmul.mubr.bf16.gmra.mrb[12].mxu1 %v4396_v25 }
 0x141   :  { %3247 = vmatpush1.bf16.msra.mxu0 %v5600_v26  ;;  %3393 = vmatpush1.bf16.msra.mxu1 %v5603_v27 }
 0x142   :  { %3248 = vmatprep.subr.bf16.mxu0 %v5608_v28  ;;  %3394 = vmatprep.subr.bf16.mxu1 %v5611_v29 }
 0x145   :  { %3249 = vmatpush1.bf16.msra.mxu0 %v5606_v30  ;;  %3395 = vmatpush1.bf16.msra.mxu1 %v5609_v31 }
 0x146   :  { %3250 = vmatprep.subr.bf16.mxu0 %v5614_v32  ;;  %3396 = vmatprep.subr.bf16.mxu1 %v5617_v33 }
 0x149   :  { %3251 = vmatpush1.bf16.msra.mxu0 %v5612_v34  ;;  %3397 = vmatpush1.bf16.msra.mxu1 %v5615_v35 }
 0x14a   :  { %3252 = vmatprep.subr.bf16.mxu0 %v5620_v36  ;;  %3398 = vmatprep.subr.bf16.mxu1 %v5623_v37 }
 0x14d   :  { %3253 = vmatpush1.bf16.msra.mxu0 %v5618_v38  ;;  %3399 = vmatpush1.bf16.msra.mxu1 %v5621_v39 }
 0x14e   :  { %3254 = vmatprep.subr.bf16.mxu0 %v5626_v40  ;;  %3400 = vmatprep.subr.bf16.mxu1 %v5629_v41 }
 0x151   :  { %3255 = vmatpush1.bf16.msra.mxu0 %v5624_v42  ;;  %3401 = vmatpush1.bf16.msra.mxu1 %v5627_v43  ;;  %v5660_v43 = vld [vmem:[#allocation5 + $0x200] ss:$16 sps:$4 sm:$0xff]  }
 0x152   :  { %3256 = vmatprep.subr.bf16.mxu0 %v5632_v44  ;;  %3402 = vmatprep.subr.bf16.mxu1 %v5635_v45  ;;  %v5663_v44 = vld [vmem:[#allocation5 + $0x208] ss:$16 sps:$4 sm:$0xff]  }
 0x155   :  { %3257 = vmatpush1.bf16.msra.mxu0 %v5630_v46  ;;  %3403 = vmatpush1.bf16.msra.mxu1 %v5633_v47 }
 0x156   :  { %3258 = vmatprep.subr.bf16.mxu0 %v5638_v48  ;;  %3404 = vmatprep.subr.bf16.mxu1 %v5641_v49  ;;  %v5668_v49 = vld [vmem:[#allocation5 + $0x224] ss:$16 sps:$4 sm:$0xff]  }
 0x159   :  { %3259 = vmatpush1.bf16.msra.mxu0 %v5636_v50  ;;  %3405 = vmatpush1.bf16.msra.mxu1 %v5639_v51  ;;  %v5671_v50 = vld [vmem:[#allocation5 + $0x22c] ss:$16 sps:$4 sm:$0xff]  }
 0x15a   :  { %3260 = vmatprep.subr.bf16.mxu0 %v5644_v52  ;;  %3406 = vmatprep.subr.bf16.mxu1 %v5647_v53 }
 0x15d   :  { %3261 = vmatpush1.bf16.msra.mxu0 %v5642_v54  ;;  %3407 = vmatpush1.bf16.msra.mxu1 %v5645_v55 }
 0x15e   :  { %3262 = vmatprep.subr.bf16.mxu0 %v5650_v56  ;;  %3408 = vmatprep.subr.bf16.mxu1 %v5653_v57 }
 0x161   :  { %3263 = vmatpush1.bf16.msra.mxu0 %v5648_v58  ;;  %3409 = vmatpush1.bf16.msra.mxu1 %v5651_v59 }
 0x162   :  { %3264 = vmatprep.subr.bf16.mxu0 %v5656_v60  ;;  %3410 = vmatprep.subr.bf16.mxu1 %v5659_v61  ;;  %v5666_v61 = vld [vmem:[#allocation5 + $0x220] ss:$16 sps:$4 sm:$0xff]  }
 0x165   :  { %3265 = vmatpush1.bf16.msra.mxu0 %v5654_v62  ;;  %3411 = vmatpush1.bf16.msra.mxu1 %v5657_v63  ;;  %v5669_v62 = vld [vmem:[#allocation5 + $0x228] ss:$16 sps:$4 sm:$0xff]   ;;  %v5674_v63 = vld [vmem:[#allocation5 + $0x244] ss:$16 sps:$4 sm:$0xff]  }
 0x166   :  { %3307 = vmatprep.subr.bf16.mxu0 %v5662_v0  ;;  %3453 = vmatprep.subr.bf16.mxu1 %v5665_v1 }
 0x1fa   :  { %v2065_v13 = vpop.f32.mrb[0].mxu0  ;;  %v2357_v14 = vpop.f32.mrb[0].mxu1 }
 0x1fb   :  { %v4983_v15 = vadd.f32 %v2065_v13, %v6200_v9  ;;  %v4999_v16 = vadd.f32 %v2357_v14, %v6204_v10  ;;  %v2067_v17 = vpop.f32.mrb[1].mxu0  ;;  %v2359_v18 = vpop.f32.mrb[1].mxu1  ;;  %v5677_v13 = vld [vmem:[#allocation5 + $0x24c] ss:$16 sps:$4 sm:$0xff]  }
 0x1fc   :  { %v4984_v19 = vadd.f32 %v2067_v17, %v6208_v11  ;;  %v5000_v20 = vadd.f32 %v2359_v18, %v6212_v12  ;;  %v2069_v21 = vpop.f32.mrb[2].mxu0  ;;  %v2361_v22 = vpop.f32.mrb[2].mxu1 }
 0x1fd   :  { %v4985_v23 = vadd.f32 %v2069_v21, %v6200_v9  ;;  %v5001_v24 = vadd.f32 %v2361_v22, %v6204_v10  ;;  %v2071_v25 = vpop.f32.mrb[3].mxu0  ;;  %v2363_v26 = vpop.f32.mrb[3].mxu1  ;;  %v2396_v29 = vmax.f32 %v4983_v15, 0.0  ;;  %v2398_v30 = vmax.f32 %v4999_v16, 0.0 }
 0x1fe   :  { %v4986_v27 = vadd.f32 %v2071_v25, %v6208_v11  ;;  %v5002_v28 = vadd.f32 %v2363_v26, %v6212_v12  ;;  %v2397_v33 = vmax.f32 %v4984_v19, 0.0  ;;  %v2399_v34 = vmax.f32 %v5000_v20, 0.0  ;;  %v5675_v25 = vld [vmem:[#allocation5 + $0x248] ss:$16 sps:$4 sm:$0xff]  }
 0x1ff   :  { %v2400_v31 = vmax.f32 %v4985_v23, 0.0  ;;  %v2402_v32 = vmax.f32 %v5001_v24, 0.0  ;;  %v5672_v24 = vld [vmem:[#allocation5 + $0x240] ss:$16 sps:$4 sm:$0xff]  }
 0x200   :  { %v2401_v35 = vmax.f32 %v4986_v27, 0.0  ;;  %v2403_v36 = vmax.f32 %v5002_v28, 0.0 }
 0x201   :  { %v6222_v37 = vpack.c.bf16 %v2400_v31, %v2396_v29  ;;  %v6224_v38 = vpack.c.bf16 %v2402_v32, %v2398_v30  ;;  %v5680_v30 = vld [vmem:[#allocation5 + $0x264] ss:$16 sps:$4 sm:$0xff]   ;;  %v5683_v31 = vld [vmem:[#allocation5 + $0x26c] ss:$16 sps:$4 sm:$0xff]  }
 0x202   :  { %v6226_v39 = vpack.c.bf16 %v2401_v35, %v2397_v33  ;;  %v6228_v40 = vpack.c.bf16 %v2403_v36, %v2399_v34  ;;  %v2075_v41 = vpop.f32.mrb[4].mxu0  ;;  %v2367_v42 = vpop.f32.mrb[4].mxu1 }
 0x203   :  { %v4987_v45 = vadd.f32 %v2075_v41, %v6200_v9  ;;  %v5003_v46 = vadd.f32 %v2367_v42, %v6204_v10  ;;  %v2077_v47 = vpop.f32.mrb[5].mxu0  ;;  %v2369_v48 = vpop.f32.mrb[5].mxu1 }
 0x204   :  { %v4988_v51 = vadd.f32 %v2077_v47, %v6208_v11  ;;  %v5004_v52 = vadd.f32 %v2369_v48, %v6212_v12  ;;  %v2079_v53 = vpop.f32.mrb[6].mxu0  ;;  %v2371_v54 = vpop.f32.mrb[6].mxu1  ;;  %3266 = vmatprep.mubr.bf16.mxu0 %v6226_v39  ;;  %3412 = vmatprep.mubr.bf16.mxu1 %v6226_v39  ;;  %v5681_v47 = vld [vmem:[#allocation5 + $0x268] ss:$16 sps:$4 sm:$0xff]   ;;  %v5686_v48 = vld [vmem:[#allocation5 + $0x284] ss:$16 sps:$4 sm:$0xff]  }
 0x205   :  { %v4989_v55 = vadd.f32 %v2079_v53, %v6200_v9  ;;  %v5005_v56 = vadd.f32 %v2371_v54, %v6204_v10  ;;  %v2081_v57 = vpop.f32.mrb[7].mxu0  ;;  %v2373_v58 = vpop.f32.mrb[7].mxu1  ;;  %3267 = vmatmul.mubr.bf16.vlgmr.msra.gmra.mrb[16].mxu0 %v6222_v37  ;;  %3413 = vmatmul.mubr.bf16.vlgmr.msra.gmra.mrb[16].mxu1 %v6222_v37  ;;  %v2404_v0 = vmax.f32 %v4987_v45, 0.0  ;;  %v2406_v1 = vmax.f32 %v5003_v46, 0.0  ;;  %v5678_v46 = vld [vmem:[#allocation5 + $0x260] ss:$16 sps:$4 sm:$0xff]  }
 0x206   :  { %v4990_v59 = vadd.f32 %v2081_v57, %v6208_v11  ;;  %v5006_v60 = vadd.f32 %v2373_v58, %v6212_v12  ;;  %3308 = vmatpush1.bf16.msra.mxu0 %v5660_v43  ;;  %3454 = vmatpush1.bf16.msra.mxu1 %v5663_v44  ;;  %v2405_v14 = vmax.f32 %v4988_v51, 0.0  ;;  %v2407_v15 = vmax.f32 %v5004_v52, 0.0  ;;  %v5689_v53 = vld [vmem:[#allocation5 + $0x28c] ss:$16 sps:$4 sm:$0xff]  }
 0x207   :  { %v2408_v2 = vmax.f32 %v4989_v55, 0.0  ;;  %v2410_v6 = vmax.f32 %v5005_v56, 0.0  ;;  %3309 = vmatprep.subr.bf16.mxu0 %v5668_v49  ;;  %3455 = vmatprep.subr.bf16.mxu1 %v5671_v50 }
 0x208   :  { %v2409_v16 = vmax.f32 %v4990_v59, 0.0  ;;  %v2411_v17 = vmax.f32 %v5006_v60, 0.0 }
 0x209   :  { %v6242_v18 = vpack.c.bf16 %v2408_v2, %v2404_v0  ;;  %v6244_v19 = vpack.c.bf16 %v2410_v6, %v2406_v1  ;;  %v5684_v0 = vld [vmem:[#allocation5 + $0x280] ss:$16 sps:$4 sm:$0xff]   ;;  %v5687_v1 = vld [vmem:[#allocation5 + $0x288] ss:$16 sps:$4 sm:$0xff]  }
 0x20a   :  { %v6246_v20 = vpack.c.bf16 %v2409_v16, %v2405_v14  ;;  %v6248_v21 = vpack.c.bf16 %v2411_v17, %v2407_v15  ;;  %3310 = vmatpush1.bf16.msra.mxu0 %v5666_v61  ;;  %3456 = vmatpush1.bf16.msra.mxu1 %v5669_v62  ;;  %v2085_v22 = vpop.f32.mrb[8].mxu0  ;;  %v2377_v23 = vpop.f32.mrb[8].mxu1  ;;  %v5692_v15 = vld [vmem:[#allocation5 + $0x2a4] ss:$16 sps:$4 sm:$0xff]   ;;  %v5695_v16 = vld [vmem:[#allocation5 + $0x2ac] ss:$16 sps:$4 sm:$0xff]  }
 0x20b   :  { %v4991_v26 = vadd.f32 %v2085_v22, %v6200_v9  ;;  %v5007_v27 = vadd.f32 %v2377_v23, %v6204_v10  ;;  %v2087_v28 = vpop.f32.mrb[9].mxu0  ;;  %v2379_v29 = vpop.f32.mrb[9].mxu1  ;;  %3311 = vmatprep.subr.bf16.mxu0 %v5674_v63  ;;  %3457 = vmatprep.subr.bf16.mxu1 %v5677_v13 }
 0x20c   :  { %v4992_v32 = vadd.f32 %v2087_v28, %v6208_v11  ;;  %v5008_v33 = vadd.f32 %v2379_v29, %v6212_v12  ;;  %v2089_v34 = vpop.f32.mrb[10].mxu0  ;;  %v2381_v35 = vpop.f32.mrb[10].mxu1  ;;  %3276 = vmatprep.mubr.bf16.mxu0 %v6246_v20  ;;  %3422 = vmatprep.mubr.bf16.mxu1 %v6246_v20 }
 0x20d   :  { %v4993_v36 = vadd.f32 %v2089_v34, %v6200_v9  ;;  %v5009_v41 = vadd.f32 %v2381_v35, %v6204_v10  ;;  %v2091_v42 = vpop.f32.mrb[11].mxu0  ;;  %v2383_v43 = vpop.f32.mrb[11].mxu1  ;;  %3277 = vmatmul.mubr.bf16.gmra.mrb[20].mxu0 %v6242_v18  ;;  %3423 = vmatmul.mubr.bf16.gmra.mrb[20].mxu1 %v6242_v18  ;;  %v2412_v49 = vmax.f32 %v4991_v26, 0.0  ;;  %v2414_v50 = vmax.f32 %v5007_v27, 0.0 }
 0x20e   :  { %v4994_v44 = vadd.f32 %v2091_v42, %v6208_v11  ;;  %v5010_v45 = vadd.f32 %v2383_v43, %v6212_v12  ;;  %3312 = vmatpush1.bf16.msra.mxu0 %v5672_v24  ;;  %3458 = vmatpush1.bf16.msra.mxu1 %v5675_v25  ;;  %v2413_v54 = vmax.f32 %v4992_v32, 0.0  ;;  %v2415_v55 = vmax.f32 %v5008_v33, 0.0  ;;  %v5693_v32 = vld [vmem:[#allocation5 + $0x2a8] ss:$16 sps:$4 sm:$0xff]   ;;  %v5698_v33 = vld [vmem:[#allocation5 + $0x2c4] ss:$16 sps:$4 sm:$0xff]  }
 0x20f   :  { %v2416_v51 = vmax.f32 %v4993_v36, 0.0  ;;  %v2418_v52 = vmax.f32 %v5009_v41, 0.0  ;;  %3313 = vmatprep.subr.bf16.mxu0 %v5680_v30  ;;  %3459 = vmatprep.subr.bf16.mxu1 %v5683_v31  ;;  %v5690_v31 = vld [vmem:[#allocation5 + $0x2a0] ss:$16 sps:$4 sm:$0xff]  }
 0x210   :  { %v2417_v56 = vmax.f32 %v4994_v44, 0.0  ;;  %v2419_v57 = vmax.f32 %v5010_v45, 0.0 }
 0x211   :  { %v6262_v58 = vpack.c.bf16 %v2416_v51, %v2412_v49  ;;  %v6264_v59 = vpack.c.bf16 %v2418_v52, %v2414_v50  ;;  %v5704_v49 = vld [vmem:[#allocation5 + $0x2e4] ss:$16 sps:$4 sm:$0xff]   ;;  %v5707_v50 = vld [vmem:[#allocation5 + $0x2ec] ss:$16 sps:$4 sm:$0xff]   ;;  %v5702_v51 = vld [vmem:[#allocation5 + $0x2e0] ss:$16 sps:$4 sm:$0xff]  }
 0x212   :  { %v6266_v60 = vpack.c.bf16 %v2417_v56, %v2413_v54  ;;  %v6268_v61 = vpack.c.bf16 %v2419_v57, %v2415_v55  ;;  %3314 = vmatpush1.bf16.msra.mxu0 %v5678_v46  ;;  %3460 = vmatpush1.bf16.msra.mxu1 %v5681_v47  ;;  %v2095_v62 = vpop.f32.mrb[12].mxu0  ;;  %v2387_v63 = vpop.f32.mrb[12].mxu1  ;;  %v5696_v47 = vld [vmem:[#allocation5 + $0x2c0] ss:$16 sps:$4 sm:$0xff]   ;;  %v5705_v52 = vld [vmem:[#allocation5 + $0x2e8] ss:$16 sps:$4 sm:$0xff]  }
 0x213   :  { %v4995_v2 = vadd.f32 %v2095_v62, %v6200_v9  ;;  %v5011_v6 = vadd.f32 %v2387_v63, %v6204_v10  ;;  %v2097_v13 = vpop.f32.mrb[13].mxu0  ;;  %v2389_v14 = vpop.f32.mrb[13].mxu1  ;;  %3315 = vmatprep.subr.bf16.mxu0 %v5686_v48  ;;  %3461 = vmatprep.subr.bf16.mxu1 %v5689_v53  ;;  %v5699_v48 = vld [vmem:[#allocation5 + $0x2c8] ss:$16 sps:$4 sm:$0xff]   ;;  %v5710_v53 = vld [vmem:[#allocation5 + $0x304] ss:$16 sps:$4 sm:$0xff]  }
 0x214   :  { %v4996_v17 = vadd.f32 %v2097_v13, %v6208_v11  ;;  %v5012_v22 = vadd.f32 %v2389_v14, %v6212_v12  ;;  %v2099_v23 = vpop.f32.mrb[14].mxu0  ;;  %v2391_v24 = vpop.f32.mrb[14].mxu1  ;;  %3286 = vmatprep.mubr.bf16.mxu0 %v6266_v60  ;;  %3432 = vmatprep.mubr.bf16.mxu1 %v6266_v60  ;;  %v5713_v54 = vld [vmem:[#allocation5 + $0x30c] ss:$16 sps:$4 sm:$0xff]   ;;  %v5708_v55 = vld [vmem:[#allocation5 + $0x300] ss:$16 sps:$4 sm:$0xff]  }
 0x215   :  { %v4997_v25 = vadd.f32 %v2099_v23, %v6200_v9  ;;  %v5013_v26 = vadd.f32 %v2391_v24, %v6204_v10  ;;  %v2101_v27 = vpop.f32.mrb[15].mxu0  ;;  %v2393_v28 = vpop.f32.mrb[15].mxu1  ;;  %3287 = vmatmul.mubr.bf16.gmra.mrb[24].mxu0 %v6262_v58  ;;  %3433 = vmatmul.mubr.bf16.gmra.mrb[24].mxu1 %v6262_v58  ;;  %v2420_v34 = vmax.f32 %v4995_v2, 0.0  ;;  %v2422_v35 = vmax.f32 %v5011_v6, 0.0  ;;  %v5701_v10 = vld [vmem:[#allocation5 + $0x2cc] ss:$16 sps:$4 sm:$0xff]  }
 0x216   :  { %v4998_v29 = vadd.f32 %v2101_v27, %v6208_v11  ;;  %v5014_v30 = vadd.f32 %v2393_v28, %v6212_v12  ;;  %3316 = vmatpush1.bf16.msra.mxu0 %v5684_v0  ;;  %3462 = vmatpush1.bf16.msra.mxu1 %v5687_v1  ;;  %v2421_v41 = vmax.f32 %v4996_v17, 0.0  ;;  %v2423_v42 = vmax.f32 %v5012_v22, 0.0  ;;  %v5711_v56 = vld [vmem:[#allocation5 + $0x308] ss:$16 sps:$4 sm:$0xff]   ;;  %v5716_v57 = vld [vmem:[#allocation5 + $0x324] ss:$16 sps:$4 sm:$0xff]  }
 0x217   :  { %v2424_v9 = vmax.f32 %v4997_v25, 0.0  ;;  %v2426_v36 = vmax.f32 %v5013_v26, 0.0  ;;  %3317 = vmatprep.subr.bf16.mxu0 %v5692_v15  ;;  %3463 = vmatprep.subr.bf16.mxu1 %v5695_v16  ;;  %v5719_v62 = vld [vmem:[#allocation5 + $0x32c] ss:$16 sps:$4 sm:$0xff]   ;;  %v5714_v63 = vld [vmem:[#allocation5 + $0x320] ss:$16 sps:$4 sm:$0xff]  }
 0x218   :  { %v2425_v43 = vmax.f32 %v4998_v29, 0.0  ;;  %v2427_v44 = vmax.f32 %v5014_v30, 0.0  ;;  %v5717_v0 = vld [vmem:[#allocation5 + $0x328] ss:$16 sps:$4 sm:$0xff]   ;;  %v5722_v1 = vld [vmem:[#allocation5 + $0x344] ss:$16 sps:$4 sm:$0xff]  }
 0x219   :  { %v6282_v45 = vpack.c.bf16 %v2424_v9, %v2420_v34  ;;  %v6284_v11 = vpack.c.bf16 %v2426_v36, %v2422_v35  ;;  %v5725_v2 = vld [vmem:[#allocation5 + $0x34c] ss:$16 sps:$4 sm:$0xff]   ;;  %v5720_v6 = vld [vmem:[#allocation5 + $0x340] ss:$16 sps:$4 sm:$0xff]   ;;  %v5723_v13 = vld [vmem:[#allocation5 + $0x348] ss:$16 sps:$4 sm:$0xff]  }
 0x21a   :  { %v6286_v12 = vpack.c.bf16 %v2425_v43, %v2421_v41  ;;  %v6288_v46 = vpack.c.bf16 %v2427_v44, %v2423_v42  ;;  %3318 = vmatpush1.bf16.msra.mxu0 %v5690_v31  ;;  %3464 = vmatpush1.bf16.msra.mxu1 %v5693_v32  ;;  %v5728_v14 = vld [vmem:[#allocation5 + $0x364] ss:$16 sps:$4 sm:$0xff]   ;;  %v5731_v15 = vld [vmem:[#allocation5 + $0x36c] ss:$16 sps:$4 sm:$0xff]   ;;  %v5726_v16 = vld [vmem:[#allocation5 + $0x360] ss:$16 sps:$4 sm:$0xff]  }
 0x21b   :  { %3319 = vmatprep.subr.bf16.mxu0 %v5698_v33  ;;  %3465 = vmatprep.subr.bf16.mxu1 %v5701_v10  ;;  %v5729_v17 = vld [vmem:[#allocation5 + $0x368] ss:$16 sps:$4 sm:$0xff]   ;;  %v5734_v22 = vld [vmem:[#allocation5 + $0x384] ss:$16 sps:$4 sm:$0xff]   ;;  %v5737_v23 = vld [vmem:[#allocation5 + $0x38c] ss:$16 sps:$4 sm:$0xff]  }
 0x21c   :  { %3296 = vmatprep.mubr.bf16.mxu0 %v6286_v12  ;;  %3442 = vmatprep.mubr.bf16.mxu1 %v6286_v12  ;;  %v5732_v24 = vld [vmem:[#allocation5 + $0x380] ss:$16 sps:$4 sm:$0xff]   ;;  %v5735_v25 = vld [vmem:[#allocation5 + $0x388] ss:$16 sps:$4 sm:$0xff]   ;;  %v5740_v26 = vld [vmem:[#allocation5 + $0x3a4] ss:$16 sps:$4 sm:$0xff]  }
 0x21d   :  { %3297 = vmatmul.mubr.bf16.gmra.mrb[28].mxu0 %v6282_v45  ;;  %3443 = vmatmul.mubr.bf16.gmra.mrb[28].mxu1 %v6282_v45  ;;  %v5743_v27 = vld [vmem:[#allocation5 + $0x3ac] ss:$16 sps:$4 sm:$0xff]   ;;  %v5738_v28 = vld [vmem:[#allocation5 + $0x3a0] ss:$16 sps:$4 sm:$0xff]   ;;  %v5741_v29 = vld [vmem:[#allocation5 + $0x3a8] ss:$16 sps:$4 sm:$0xff]  }
 0x21e   :  { %3320 = vmatpush1.bf16.msra.mxu0 %v5696_v47  ;;  %3466 = vmatpush1.bf16.msra.mxu1 %v5699_v48  ;;  %v5746_v30 = vld [vmem:[#allocation5 + $0x3c4] ss:$16 sps:$4 sm:$0xff]   ;;  %v5749_v31 = vld [vmem:[#allocation5 + $0x3cc] ss:$16 sps:$4 sm:$0xff]   ;;  %v5744_v32 = vld [vmem:[#allocation5 + $0x3c0] ss:$16 sps:$4 sm:$0xff]  }
 0x21f   :  { %3339 = vmatprep.mubr.bf16.mxu0 %v6228_v40  ;;  %3485 = vmatprep.mubr.bf16.mxu1 %v6228_v40  ;;  %v5747_v33 = vld [vmem:[#allocation5 + $0x3c8] ss:$16 sps:$4 sm:$0xff]   ;;  %v5752_v34 = vld [vmem:[#allocation5 + $0x3e4] ss:$16 sps:$4 sm:$0xff]   ;;  %v5755_v35 = vld [vmem:[#allocation5 + $0x3ec] ss:$16 sps:$4 sm:$0xff]  }
 0x220   :  { %3321 = vmatprep.subr.bf16.mxu0 %v5704_v49  ;;  %3467 = vmatprep.subr.bf16.mxu1 %v5707_v50  ;;  %v5750_v9 = vld [vmem:[#allocation5 + $0x3e0] ss:$16 sps:$4 sm:$0xff]   ;;  %v5753_v36 = vld [vmem:[#allocation5 + $0x3e8] ss:$16 sps:$4 sm:$0xff]  }
 0x221   :  { %v5756_v10 = vld [vmem:[%s6697_s7 + $0x40] sm:$0xff]   ;;  %v5758_v42 = vld [vmem:[%s6697_s7 + $0x48] sm:$0xff]   ;;  %v5760_v44 = vld [vmem:[%s6697_s7 + $0x50] sm:$0xff]  }
 0x222   :  { %3322 = vmatpush1.bf16.msra.mxu0 %v5702_v51  ;;  %3468 = vmatpush1.bf16.msra.mxu1 %v5705_v52  ;;  %v5757_v41 = vld [vmem:[%s6697_s7] sm:$0xff]   ;;  %v5759_v43 = vld [vmem:[%s6697_s7 + $0x8] sm:$0xff]   ;;  %v5761_v47 = vld [vmem:[%s6697_s7 + $0x10] sm:$0xff]  }
 0x223   :  { %3323 = vmatprep.subr.bf16.mxu0 %v5710_v53  ;;  %3469 = vmatprep.subr.bf16.mxu1 %v5713_v54  ;;  %v5762_v48 = vld [vmem:[%s6697_s7 + $0x58] sm:$0xff]   ;;  %v5764_v50 = vld [vmem:[%s6697_s7 + $0x60] sm:$0xff]   ;;  %v5766_v52 = vld [vmem:[%s6697_s7 + $0x68] sm:$0xff]  }
 0x224   :  { %v5763_v49 = vld [vmem:[%s6697_s7 + $0x18] sm:$0xff]   ;;  %v5765_v51 = vld [vmem:[%s6697_s7 + $0x20] sm:$0xff]   ;;  %v5767_v53 = vld [vmem:[%s6697_s7 + $0x28] sm:$0xff]  }
 0x225   :  { %v5768_v54 = vld [vmem:[%s6697_s7 + $0x70] sm:$0xff]  }
 0x226   :  { %3324 = vmatpush1.bf16.msra.mxu0 %v5708_v55  ;;  %3470 = vmatpush1.bf16.msra.mxu1 %v5711_v56  ;;  %v5769_v55 = vld [vmem:[%s6697_s7 + $0x30] sm:$0xff]   ;;  %v5770_v56 = vld [vmem:[%s6697_s7 + $0x78] sm:$0xff]  }
 0x227   :  { %3325 = vmatprep.subr.bf16.mxu0 %v5716_v57  ;;  %3471 = vmatprep.subr.bf16.mxu1 %v5719_v62  ;;  %v5771_v57 = vld [vmem:[%s6697_s7 + $0x38] sm:$0xff]   ;;  %v6362_v62 = vld [vmem:[%s6697_s7 + $0xc0] sm:$0xff]  }
 0x22a   :  { %3326 = vmatpush1.bf16.msra.mxu0 %v5714_v63  ;;  %3472 = vmatpush1.bf16.msra.mxu1 %v5717_v0  ;;  %v6367_v63 = vld [vmem:[%s6697_s7 + $0x80] sm:$0xff]   ;;  %v6381_v0 = vld [vmem:[%s6697_s7 + $0x88] sm:$0xff]  }
 0x22b   :  { %3327 = vmatprep.subr.bf16.mxu0 %v5722_v1  ;;  %3473 = vmatprep.subr.bf16.mxu1 %v5725_v2  ;;  %v6387_v1 = vld [vmem:[%s6697_s7 + $0xd0] sm:$0xff]   ;;  %v6407_v2 = vld [vmem:[%s6697_s7 + $0x98] sm:$0xff]  }
 0x22e   :  { %3328 = vmatpush1.bf16.msra.mxu0 %v5720_v6  ;;  %3474 = vmatpush1.bf16.msra.mxu1 %v5723_v13  ;;  %v6413_v6 = vld [vmem:[%s6697_s7 + $0xe0] sm:$0xff]   ;;  %v6433_v13 = vld [vmem:[%s6697_s7 + $0xa8] sm:$0xff]  }
 0x22f   :  { %3329 = vmatprep.subr.bf16.mxu0 %v5728_v14  ;;  %3475 = vmatprep.subr.bf16.mxu1 %v5731_v15  ;;  %v6439_v14 = vld [vmem:[%s6697_s7 + $0xf0] sm:$0xff]   ;;  %v6459_v15 = vld [vmem:[%s6697_s7 + $0xb8] sm:$0xff]  }
 0x232   :  { %3330 = vmatpush1.bf16.msra.mxu0 %v5726_v16  ;;  %3476 = vmatpush1.bf16.msra.mxu1 %v5729_v17  ;;  %v5790_v16 = vld [vmem:[%s6695_s5 + $0x48] sm:$0xff]   ;;  %v5794_v17 = vld [vmem:[%s6695_s5 + $0x58] sm:$0xff]  }
 0x233   :  { %3331 = vmatprep.subr.bf16.mxu0 %v5734_v22  ;;  %3477 = vmatprep.subr.bf16.mxu1 %v5737_v23  ;;  %v5795_v22 = vld [vmem:[%s6695_s5 + $0x18] sm:$0xff]   ;;  %v5796_v23 = vld [vmem:[%s6695_s5 + $0x60] sm:$0xff]  }
 0x236   :  { %3332 = vmatpush1.bf16.msra.mxu0 %v5732_v24  ;;  %3478 = vmatpush1.bf16.msra.mxu1 %v5735_v25  ;;  %v5797_v24 = vld [vmem:[%s6695_s5 + $0x20] sm:$0xff]   ;;  %v5798_v25 = vld [vmem:[%s6695_s5 + $0x68] sm:$0xff]  }
 0x237   :  { %3333 = vmatprep.subr.bf16.mxu0 %v5740_v26  ;;  %3479 = vmatprep.subr.bf16.mxu1 %v5743_v27  ;;  %v5799_v26 = vld [vmem:[%s6695_s5 + $0x28] sm:$0xff]   ;;  %v5800_v27 = vld [vmem:[%s6695_s5 + $0x70] sm:$0xff]  }
 0x23a   :  { %3334 = vmatpush1.bf16.msra.mxu0 %v5738_v28  ;;  %3480 = vmatpush1.bf16.msra.mxu1 %v5741_v29  ;;  %v5801_v28 = vld [vmem:[%s6695_s5 + $0x30] sm:$0xff]   ;;  %v5802_v29 = vld [vmem:[%s6695_s5 + $0x78] sm:$0xff]  }
 0x23b   :  { %3335 = vmatprep.subr.bf16.mxu0 %v5746_v30  ;;  %3481 = vmatprep.subr.bf16.mxu1 %v5749_v31  ;;  %v5803_v30 = vld [vmem:[%s6695_s5 + $0x38] sm:$0xff]   ;;  %v2572_v31 = vld [vmem:[%s6694_s4] sm:$0xf] }
 0x23e   :  { %3336 = vmatpush1.bf16.msra.mxu0 %v5744_v32  ;;  %3482 = vmatpush1.bf16.msra.mxu1 %v5747_v33  ;;  %v6520_v32 = vrot.slane %v2572_v31, %v362_v5  ;;  %v6524_v33 = vrot.slane %v2572_v31, %v366_v8 }
 0x23f   :  { %3337 = vmatprep.subr.bf16.mxu0 %v5752_v34  ;;  %3483 = vmatprep.subr.bf16.mxu1 %v5755_v35 }
 0x242   :  { %3338 = vmatpush1.bf16.msra.mxu0 %v5750_v9  ;;  %3484 = vmatpush1.bf16.msra.mxu1 %v5753_v36  ;;  %v6528_v9 = vrot.slane %v2572_v31, %v354_v4 }
 0x243   :  { %4887 = vmatprep.subr.bf16.mxu1 %v5756_v10 }
 0x245   :  { %3340 = vmatmul.mubr.bf16.vlgmr.msra.gmra.mrb[16].mxu0 %v6224_v38  ;;  %3486 = vmatmul.mubr.bf16.vlgmr.msra.gmra.mrb[16].mxu1 %v6224_v38 }
 0x246   :  { %3349 = vmatprep.mubr.bf16.mxu0 %v6248_v21  ;;  %3495 = vmatprep.mubr.bf16.mxu1 %v6248_v21 }
 0x247   :  { %4888 = vmatpush3.bf16.msra.mxu1 %v5757_v41 }
 0x248   :  { %4889 = vmatprep.subr.bf16.mxu1 %v5758_v42 }
 0x24b   :  { %4890 = vmatpush3.bf16.msra.mxu1 %v5759_v43 }
 0x24c   :  { %4891 = vmatprep.subr.bf16.mxu1 %v5760_v44 }
 0x24d   :  { %3350 = vmatmul.mubr.bf16.gmra.mrb[20].mxu0 %v6244_v19  ;;  %3496 = vmatmul.mubr.bf16.gmra.mrb[20].mxu1 %v6244_v19 }
 0x24e   :  { %3359 = vmatprep.mubr.bf16.mxu0 %v6268_v61  ;;  %3505 = vmatprep.mubr.bf16.mxu1 %v6268_v61 }
 0x24f   :  { %4892 = vmatpush3.bf16.msra.mxu1 %v5761_v47  ;;  %v6534_v47 = vrot.slane %v2572_v31, %v358_v7 }
 0x250   :  { %4893 = vmatprep.subr.bf16.mxu1 %v5762_v48 }
 0x253   :  { %4894 = vmatpush3.bf16.msra.mxu1 %v5763_v49 }
 0x254   :  { %4895 = vmatprep.subr.bf16.mxu1 %v5764_v50 }
 0x255   :  { %3360 = vmatmul.mubr.bf16.gmra.mrb[24].mxu0 %v6264_v59  ;;  %3506 = vmatmul.mubr.bf16.gmra.mrb[24].mxu1 %v6264_v59 }
 0x256   :  { %3369 = vmatprep.mubr.bf16.mxu0 %v6288_v46  ;;  %3515 = vmatprep.mubr.bf16.mxu1 %v6288_v46 }
 0x257   :  { %4896 = vmatpush3.bf16.msra.mxu1 %v5765_v51 }
 0x258   :  { %4897 = vmatprep.subr.bf16.mxu1 %v5766_v52 }
 0x25b   :  { %4898 = vmatpush3.bf16.msra.mxu1 %v5767_v53 }
 0x25c   :  { %4899 = vmatprep.subr.bf16.mxu1 %v5768_v54 }
 0x25d   :  { %3370 = vmatmul.mubr.bf16.gmra.mrb[28].mxu0 %v6284_v11  ;;  %3516 = vmatmul.mubr.bf16.gmra.mrb[28].mxu1 %v6284_v11 }
 0x25e   :  { %4150 = vmatprep.mubr.bf16.mxu1 %v6226_v39  ;;  %v6373_v39 = vld [vmem:[%s6697_s7 + $0xc8] sm:$0xff]  }
 0x25f   :  { %4900 = vmatpush3.bf16.msra.mxu1 %v5769_v55 }
 0x260   :  { %4901 = vmatprep.subr.bf16.mxu1 %v5770_v56 }
 0x263   :  { %4902 = vmatpush3.bf16.msra.mxu1 %v5771_v57 }
 0x264   :  { %4967 = vmatprep.subr.bf16.mxu1 %v6362_v62 }
 0x266   :  { %4151 = vmatmul.mubr.bf16.vlgmr.msra.gmra.mrb[32].mxu1 %v6222_v37  ;;  %v6393_v37 = vld [vmem:[%s6697_s7 + $0x90] sm:$0xff]  }
 0x267   :  { %4158 = vmatprep.mubr.bf16.mxu1 %v6246_v20  ;;  %4975 = vmatpush3.bf16.msra.mxu1 %v6367_v63  ;;  %v6399_v20 = vld [vmem:[%s6697_s7 + $0xd8] sm:$0xff]  }
 0x268   :  { %4968 = vmatprep.subr.bf16.mxu1 %v6373_v39 }
 0x26b   :  { %4976 = vmatpush3.bf16.msra.mxu1 %v6381_v0 }
 0x26c   :  { %4969 = vmatprep.subr.bf16.mxu1 %v6387_v1 }
 0x26e   :  { %4159 = vmatmul.mubr.bf16.gmra.mrb[36].mxu1 %v6242_v18  ;;  %v6419_v18 = vld [vmem:[%s6697_s7 + $0xa0] sm:$0xff]  }
 0x26f   :  { %4166 = vmatprep.mubr.bf16.mxu1 %v6266_v60  ;;  %4977 = vmatpush3.bf16.msra.mxu1 %v6393_v37  ;;  %v6425_v60 = vld [vmem:[%s6697_s7 + $0xe8] sm:$0xff]  }
 0x270   :  { %4970 = vmatprep.subr.bf16.mxu1 %v6399_v20 }
 0x273   :  { %4978 = vmatpush3.bf16.msra.mxu1 %v6407_v2 }
 0x274   :  { %4971 = vmatprep.subr.bf16.mxu1 %v6413_v6 }
 0x276   :  { %4167 = vmatmul.mubr.bf16.gmra.mrb[40].mxu1 %v6262_v58  ;;  %v6445_v58 = vld [vmem:[%s6697_s7 + $0xb0] sm:$0xff]  }
 0x277   :  { %4174 = vmatprep.mubr.bf16.mxu1 %v6286_v12  ;;  %4979 = vmatpush3.bf16.msra.mxu1 %v6419_v18  ;;  %v6451_v12 = vld [vmem:[%s6697_s7 + $0xf8] sm:$0xff]  }
 0x278   :  { %4972 = vmatprep.subr.bf16.mxu1 %v6425_v60 }
 0x27b   :  { %4980 = vmatpush3.bf16.msra.mxu1 %v6433_v13 }
 0x27c   :  { %4973 = vmatprep.subr.bf16.mxu1 %v6439_v14 }
 0x27e   :  { %4175 = vmatmul.mubr.bf16.gmra.mrb[44].mxu1 %v6282_v45  ;;  %v5788_v45 = vld [vmem:[%s6695_s5 + $0x40] sm:$0xff]  }
 0x27f   :  { %4981 = vmatpush3.bf16.msra.mxu1 %v6445_v58  ;;  %4231 = vmatprep.mubr.bf16.mxu1 %v6268_v61  ;;  %v5789_v61 = vld [vmem:[%s6695_s5] sm:$0xff]  }
 0x280   :  { %4974 = vmatprep.subr.bf16.mxu1 %v6451_v12  ;;  %4847 = vmatprep.subr.bf16.mxu0 %v5788_v45 }
 0x281   :  { %4848 = vmatpush3.bf16.msra.mxu0 %v5789_v61 }
 0x282   :  { %4849 = vmatprep.subr.bf16.mxu0 %v5790_v16 }
 0x283   :  { %4982 = vmatpush3.bf16.msra.mxu1 %v6459_v15 }
 0x286   :  { %4232 = vmatmul.mubr.bf16.vlgmr.msra.gmra.mrb[48].mxu1 %v6264_v59  ;;  %v5791_v59 = vld [vmem:[%s6695_s5 + $0x8] sm:$0xff]  }
 0x287   :  { %4239 = vmatprep.mubr.bf16.mxu1 %v6288_v46  ;;  %4850 = vmatpush3.bf16.msra.mxu0 %v5791_v59  ;;  %v5793_v46 = vld [vmem:[%s6695_s5 + $0x10] sm:$0xff]  }
 0x28e   :  { %4240 = vmatmul.mubr.bf16.gmra.mrb[52].mxu1 %v6284_v11  ;;  %v5792_v11 = vld [vmem:[%s6695_s5 + $0x50] sm:$0xff]  }
 0x28f   :  { %4851 = vmatprep.subr.bf16.mxu0 %v5792_v11 }
 0x290   :  { %4852 = vmatpush3.bf16.msra.mxu0 %v5793_v46 }
 0x291   :  { %4853 = vmatprep.subr.bf16.mxu0 %v5794_v17 }
 0x294   :  { %4854 = vmatpush3.bf16.msra.mxu0 %v5795_v22 }
 0x295   :  { %4855 = vmatprep.subr.bf16.mxu0 %v5796_v23 }
 0x298   :  { %4856 = vmatpush3.bf16.msra.mxu0 %v5797_v24 }
 0x299   :  { %4857 = vmatprep.subr.bf16.mxu0 %v5798_v25 }
 0x29c   :  { %4858 = vmatpush3.bf16.msra.mxu0 %v5799_v26 }
 0x29d   :  { %4859 = vmatprep.subr.bf16.mxu0 %v5800_v27 }
 0x2a0   :  { %4860 = vmatpush3.bf16.msra.mxu0 %v5801_v28 }
 0x2a1   :  { %4861 = vmatprep.subr.bf16.mxu0 %v5802_v29 }
 0x2a4   :  { %4862 = vmatpush3.bf16.msra.mxu0 %v5803_v30 }
 0x2a5   :  { %4927 = vmatprep.subr.bf16.mxu0 %v6362_v62 }
 0x318   :  { %v3341_v34 = vpop.f32.mrb[16].mxu0  ;;  %v3487_v35 = vpop.f32.mrb[16].mxu1 }
 0x319   :  { %v5031_v36 = vadd.f32 %v3487_v35, %v6520_v32  ;;  %v3343_v10 = vpop.f32.mrb[17].mxu0  ;;  %v3489_v41 = vpop.f32.mrb[17].mxu1  ;;  %v5015_v51 = vadd.f32 %v3341_v34, %v6528_v9 }
 0x31a   :  { %v5032_v42 = vadd.f32 %v3489_v41, %v6524_v33  ;;  %v3345_v43 = vpop.f32.mrb[18].mxu0  ;;  %v3491_v44 = vpop.f32.mrb[18].mxu1  ;;  %v5016_v54 = vadd.f32 %v3343_v10, %v6534_v47 }
 0x31b   :  { %v4782_v5 = vmul.f32 -1.442695, %v5031_v36  ;;  %v5033_v8 = vadd.f32 %v3491_v44, %v6520_v32  ;;  %v3347_v48 = vpop.f32.mrb[19].mxu0  ;;  %v3493_v49 = vpop.f32.mrb[19].mxu1  ;;  %v5017_v55 = vadd.f32 %v3345_v43, %v6528_v9 }
 0x31c   :  { %v4783_v50 = vmul.f32 -1.442695, %v5032_v42  ;;  %v5034_v4 = vadd.f32 %v3493_v49, %v6524_v33  ;;  %v5018_v59 = vadd.f32 %v3347_v48, %v6534_v47 }
 0x31d   :  { %5804 = vpow2.f32 %v4782_v5  ;;  %v4784_v52 = vmul.f32 -1.442695, %v5033_v8 }
 0x31e   :  { %5806 = vpow2.f32 %v4783_v50  ;;  %v4785_v53 = vmul.f32 -1.442695, %v5034_v4 }
 0x31f   :  { %5808 = vpow2.f32 %v4784_v52 }
 0x320   :  { %v3351_v3 = vpop.f32.mrb[20].mxu0  ;;  %v3497_v7 = vpop.f32.mrb[20].mxu1  ;;  %5810 = vtanh.f32 %v5015_v51 }
 0x321   :  { %v5035_v56 = vadd.f32 %v3497_v7, %v6520_v32  ;;  %v3353_v57 = vpop.f32.mrb[21].mxu0  ;;  %v3499_v62 = vpop.f32.mrb[21].mxu1  ;;  %5812 = vpow2.f32 %v4785_v53  ;;  %v5019_v25 = vadd.f32 %v3351_v3, %v6528_v9 }
 0x322   :  { %v5036_v45 = vadd.f32 %v3499_v62, %v6524_v33  ;;  %v3355_v61 = vpop.f32.mrb[22].mxu0  ;;  %v3501_v16 = vpop.f32.mrb[22].mxu1  ;;  %5814 = vtanh.f32 %v5016_v54  ;;  %v5020_v43 = vadd.f32 %v3353_v57, %v6534_v47 }
 0x323   :  { %v4786_v11 = vmul.f32 -1.442695, %v5035_v56  ;;  %v5037_v46 = vadd.f32 %v3501_v16, %v6520_v32  ;;  %v6545_v17 = vpop.f32.mrb[23].mxu0  ;;  %v3503_v22 = vpop.f32.mrb[23].mxu1  ;;  %5816 = vtanh.f32 %v5017_v55  ;;  %v5021_v55 = vadd.f32 %v3355_v61, %v6528_v9 }
 0x324   :  { %v4787_v23 = vmul.f32 -1.442695, %v5036_v45  ;;  %v5038_v24 = vadd.f32 %v3503_v22, %v6524_v33 }
 0x325   :  { %5818 = vpow2.f32 %v4786_v11  ;;  %v4788_v26 = vmul.f32 -1.442695, %v5037_v46 }
 0x326   :  { %5820 = vpow2.f32 %v4787_v23  ;;  %v4789_v30 = vmul.f32 -1.442695, %v5038_v24 }
 0x327   :  { %v5805_v27 = vpop.eup %5804  ;;  %5822 = vtanh.f32 %v5018_v59 }
 0x328   :  { %v5807_v28 = vpop.eup %5806  ;;  %v3590_v29 = vadd.f32 1.0, %v5805_v27  ;;  %5824 = vpow2.f32 %v4788_v26  ;;  %v6549_v31 = vpop.f32.mrb[24].mxu0 }
 0x329   :  { %v3507_v34 = vpop.f32.mrb[24].mxu1  ;;  %v3591_v35 = vadd.f32 1.0, %v5807_v28  ;;  %5826 = vtanh.f32 %v5019_v25  ;;  %v6552_v10 = vpop.f32.mrb[25].mxu0 }
 0x32a   :  { %v5039_v36 = vadd.f32 %v3507_v34, %v6520_v32  ;;  %v3509_v41 = vpop.f32.mrb[25].mxu1  ;;  %v5809_v42 = vpop.eup %5808  ;;  %5828 = vrcp.f32 %v3590_v29 }
 0x32b   :  { %v6555_v44 = vpop.f32.mrb[26].mxu0  ;;  %v3511_v5 = vpop.f32.mrb[26].mxu1  ;;  %5830 = vrcp.f32 %v3591_v35  ;;  %v3592_v48 = vadd.f32 1.0, %v5809_v42  ;;  %v5040_v52 = vadd.f32 %v3509_v41, %v6524_v33 }
 0x32c   :  { %v5811_v8 = vpop.eup %5810  ;;  %v6557_v49 = vpop.f32.mrb[27].mxu0  ;;  %5832 = vpow2.f32 %v4789_v30  ;;  %v4790_v51 = vmul.f32 -1.442695, %v5039_v36  ;;  %v5041_v56 = vadd.f32 %v3511_v5, %v6520_v32  ;;  %v5022_v36 = vadd.f32 %v6545_v17, %v6534_v47 }
 0x32d   :  { %v3513_v50 = vpop.f32.mrb[27].mxu1  ;;  %v5813_v4 = vpop.eup %5812  ;;  %5834 = vrcp.f32 %v3592_v48  ;;  %v4791_v45 = vmul.f32 -1.442695, %v5040_v52  ;;  %v5023_v52 = vadd.f32 %v6549_v31, %v6528_v9 }
 0x32e   :  { %v5815_v53 = vpop.eup %5814  ;;  %v3593_v54 = vadd.f32 1.0, %v5813_v4  ;;  %5836 = vtanh.f32 %v5020_v43  ;;  %v5042_v24 = vadd.f32 %v3513_v50, %v6524_v33  ;;  %v4792_v29 = vmul.f32 -1.442695, %v5041_v56 }
 0x32f   :  { %v5817_v3 = vpop.eup %5816 }
 0x330   :  { %v5819_v7 = vpop.eup %5818  ;;  %5838 = vrcp.f32 %v3593_v54  ;;  %v6562_v16 = vpop.f32.mrb[28].mxu0  ;;  %v4793_v48 = vmul.f32 -1.442695, %v5042_v24 }
 0x331   :  { %v5821_v57 = vpop.eup %5820  ;;  %v3594_v62 = vadd.f32 1.0, %v5819_v7  ;;  %5840 = vpow2.f32 %v4790_v51  ;;  %v3517_v59 = vpop.f32.mrb[28].mxu1 }
 0x332   :  { %v5823_v11 = vpop.eup %5822  ;;  %v3595_v46 = vadd.f32 1.0, %v5821_v57  ;;  %5842 = vtanh.f32 %v5021_v55  ;;  %v6564_v22 = vpop.f32.mrb[29].mxu0  ;;  %v5043_v41 = vadd.f32 %v3517_v59, %v6520_v32 }
 0x333   :  { %v3519_v23 = vpop.f32.mrb[29].mxu1  ;;  %v5825_v61 = vpop.eup %5824  ;;  %5844 = vrcp.f32 %v3594_v62 }
 0x334   :  { %v6567_v25 = vpop.f32.mrb[30].mxu0  ;;  %v3521_v26 = vpop.f32.mrb[30].mxu1  ;;  %5846 = vrcp.f32 %v3595_v46  ;;  %v3596_v28 = vadd.f32 1.0, %v5825_v61  ;;  %v5044_v54 = vadd.f32 %v3519_v23, %v6524_v33  ;;  %v4794_v17 = vmul.f32 -1.442695, %v5043_v41 }
 0x335   :  { %v5827_v27 = vpop.eup %5826  ;;  %v6569_v30 = vpop.f32.mrb[31].mxu0  ;;  %5848 = vpow2.f32 %v4791_v45 }
 0x336   :  { %v3523_v34 = vpop.f32.mrb[31].mxu1  ;;  %v5829_v35 = vpop.eup %5828  ;;  %5850 = vrcp.f32 %v3596_v28  ;;  %v4795_v61 = vmul.f32 -1.442695, %v5044_v54 }
 0x337   :  { %v5831_v42 = vpop.eup %5830  ;;  %v3638_v43 = vmul.f32 %v5829_v35, %v5811_v8  ;;  %5852 = vpow2.f32 %v4792_v29  ;;  %v5045_v8 = vadd.f32 %v3521_v26, %v6520_v32  ;;  %v5046_v32 = vadd.f32 %v3523_v34, %v6524_v33 }
 0x338   :  { %v5833_v5 = vpop.eup %5832  ;;  %v3639_v50 = vmul.f32 %v5831_v42, %v5815_v53  ;;  %5854 = vtanh.f32 %v5022_v36 }
 0x339   :  { %v5835_v4 = vpop.eup %5834  ;;  %v3597_v51 = vadd.f32 1.0, %v5833_v5  ;;  %v4903_v57 = vpop.f32.mrb[32].mxu1  ;;  %v4796_v42 = vmul.f32 -1.442695, %v5045_v8  ;;  %v4797_v33 = vmul.f32 -1.442695, %v5046_v32 }
 0x33a   :  { %v5837_v55 = vpop.eup %5836  ;;  %v3640_v7 = vmul.f32 %v5835_v4, %v5817_v3  ;;  %v4904_v53 = vpop.f32.mrb[33].mxu1  ;;  %v5024_v3 = vadd.f32 %v6552_v10, %v6534_v47  ;;  %v5025_v4 = vadd.f32 %v6555_v44, %v6528_v9 }
 0x33b   :  { %v5839_v56 = vpop.eup %5838  ;;  %5856 = vrcp.f32 %v3597_v51  ;;  %v6578_v24 = vadd.f32 %v4904_v53, %v4903_v57  ;;  %v4906_v23 = vpop.f32.mrb[34].mxu1 }
 0x33c   :  { %v5841_v62 = vpop.eup %5840  ;;  %5858 = vpow2.f32 %v4793_v48  ;;  %v3641_v45 = vmul.f32 %v5839_v56, %v5823_v11  ;;  %v3654_v59 = vpack.c.bf16 %v3640_v7, %v3638_v43  ;;  %v4907_v29 = vpop.f32.mrb[35].mxu1  ;;  %v5027_v56 = vadd.f32 %v6562_v16, %v6528_v9 }
 0x33d   :  { %v5843_v46 = vpop.eup %5842  ;;  %5860 = vtanh.f32 %v5023_v52  ;;  %v3598_v31 = vadd.f32 1.0, %v5841_v62  ;;  %v6583_v11 = vadd.f32 %v4907_v29, %v4906_v23  ;;  %v5026_v52 = vadd.f32 %v6557_v49, %v6534_v47 }
 0x33e   :  { %v5845_v28 = vpop.eup %5844  ;;  %5862 = vpow2.f32 %v4794_v17  ;;  %v3655_v35 = vpack.c.bf16 %v3641_v45, %v3639_v50  ;;  %v5028_v16 = vadd.f32 %v6564_v22, %v6534_v47 }
 0x33f   :  { %v5847_v36 = vpop.eup %5846  ;;  %5864 = vrcp.f32 %v3598_v31  ;;  %v3642_v26 = vmul.f32 %v5845_v28, %v5827_v27  ;;  %v5029_v28 = vadd.f32 %v6567_v25, %v6528_v9 }
 0x340   :  { %v5849_v41 = vpop.eup %5848  ;;  %3829 = vmatprep.mubr.bf16.mxu0 %v3655_v35  ;;  %v3643_v43 = vmul.f32 %v5847_v36, %v5837_v55  ;;  %5866 = vpow2.f32 %v4795_v61 }
 0x341   :  { %v5851_v5 = vpop.eup %5850  ;;  %v3599_v48 = vadd.f32 1.0, %v5849_v41  ;;  %3830 = vmatmul.mubr.bf16.vlgmr.msra.gmra.mrb[32].mxu0 %v3654_v59  ;;  %5868 = vtanh.f32 %v5024_v3  ;;  %v4909_v34 = vpop.f32.mrb[36].mxu1 }
 0x342   :  { %4928 = vmatpush3.bf16.msra.mxu0 %v6367_v63  ;;  %v3644_v10 = vmul.f32 %v5851_v5, %v5843_v46  ;;  %v5853_v50 = vpop.eup %5852  ;;  %v4910_v54 = vpop.f32.mrb[37].mxu1 }
 0x343   :  { %5870 = vrcp.f32 %v3599_v48  ;;  %4929 = vmatprep.subr.bf16.mxu0 %v6373_v39  ;;  %v5855_v27 = vpop.eup %5854  ;;  %v3600_v51 = vadd.f32 1.0, %v5853_v50  ;;  %v6591_v17 = vadd.f32 %v4910_v54, %v4909_v34  ;;  %v4912_v63 = vpop.f32.mrb[38].mxu1 }
 0x344   :  { %5872 = vpow2.f32 %v4796_v42  ;;  %v3656_v44 = vpack.c.bf16 %v3644_v10, %v3642_v26  ;;  %v4913_v39 = vpop.f32.mrb[39].mxu1 }
 0x345   :  { %v5857_v55 = vpop.eup %5856  ;;  %5874 = vtanh.f32 %v5025_v4  ;;  %v6596_v49 = vadd.f32 %v4913_v39, %v4912_v63 }
 0x346   :  { %v5859_v7 = vpop.eup %5858  ;;  %5876 = vrcp.f32 %v3600_v51  ;;  %4930 = vmatpush3.bf16.msra.mxu0 %v6381_v0  ;;  %v3645_v57 = vmul.f32 %v5857_v55, %v5855_v27 }
 0x347   :  { %v5861_v62 = vpop.eup %5860  ;;  %v3601_v8 = vadd.f32 1.0, %v5859_v7  ;;  %5878 = vpow2.f32 %v4797_v33  ;;  %4931 = vmatprep.subr.bf16.mxu0 %v6387_v1 }
 0x348   :  { %v5863_v53 = vpop.eup %5862  ;;  %5880 = vtanh.f32 %v5026_v52  ;;  %v3657_v45 = vpack.c.bf16 %v3645_v57, %v3643_v43 }
 0x349   :  { %v5865_v59 = vpop.eup %5864  ;;  %5882 = vrcp.f32 %v3601_v8  ;;  %v3602_v46 = vadd.f32 1.0, %v5863_v53  ;;  %v4915_v61 = vpop.f32.mrb[40].mxu1 }
 0x34a   :  { %5884 = vtanh.f32 %v5027_v56  ;;  %3837 = vmatprep.mubr.bf16.mxu0 %v3657_v45  ;;  %4932 = vmatpush3.bf16.msra.mxu0 %v6393_v37  ;;  %v3646_v0 = vmul.f32 %v5865_v59, %v5861_v62  ;;  %v5867_v31 = vpop.eup %5866  ;;  %v4916_v3 = vpop.f32.mrb[41].mxu1 }
 0x34b   :  { %5886 = vrcp.f32 %v3602_v46  ;;  %3838 = vmatmul.mubr.bf16.gmra.mrb[36].mxu0 %v3656_v44  ;;  %4933 = vmatprep.subr.bf16.mxu0 %v6399_v20  ;;  %v5869_v1 = vpop.eup %5868  ;;  %v3603_v23 = vadd.f32 1.0, %v5867_v31  ;;  %v4917_v22 = vadd.f32 %v4916_v3, %v4915_v61  ;;  %v4918_v35 = vpop.f32.mrb[42].mxu1  ;;  %v5030_v20 = vadd.f32 %v6569_v30, %v6534_v47 }
 0x34c   :  { %5888 = vtanh.f32 %v5028_v16  ;;  %v4919_v37 = vpop.f32.mrb[43].mxu1 }
 0x34d   :  { %v5871_v29 = vpop.eup %5870  ;;  %5890 = vrcp.f32 %v3603_v23  ;;  %v4920_v42 = vadd.f32 %v4919_v37, %v4918_v35 }
 0x34e   :  { %v5873_v36 = vpop.eup %5872  ;;  %4934 = vmatpush3.bf16.msra.mxu0 %v6407_v2  ;;  %v3647_v32 = vmul.f32 %v5871_v29, %v5869_v1  ;;  %5892 = vtanh.f32 %v5029_v28 }
 0x34f   :  { %v5875_v26 = vpop.eup %5874  ;;  %v3604_v41 = vadd.f32 1.0, %v5873_v36  ;;  %4935 = vmatprep.subr.bf16.mxu0 %v6413_v6 }
 0x350   :  { %v5877_v9 = vpop.eup %5876 }
 0x351   :  { %v5879_v25 = vpop.eup %5878  ;;  %5894 = vrcp.f32 %v3604_v41  ;;  %v3648_v43 = vmul.f32 %v5877_v9, %v5875_v26  ;;  %v4921_v10 = vpop.f32.mrb[44].mxu1 }
 0x352   :  { %v5881_v5 = vpop.eup %5880  ;;  %v3605_v48 = vadd.f32 1.0, %v5879_v25  ;;  %4936 = vmatpush3.bf16.msra.mxu0 %v6419_v18  ;;  %5896 = vtanh.f32 %v5030_v20  ;;  %v4922_v30 = vpop.f32.mrb[45].mxu1 }
 0x353   :  { %v5883_v2 = vpop.eup %5882  ;;  %v3658_v4 = vpack.c.bf16 %v3648_v43, %v3646_v0  ;;  %4937 = vmatprep.subr.bf16.mxu0 %v6425_v60  ;;  %v4923_v33 = vadd.f32 %v4922_v30, %v4921_v10  ;;  %v4924_v34 = vpop.f32.mrb[46].mxu1 }
 0x354   :  { %v5885_v50 = vpop.eup %5884  ;;  %5898 = vrcp.f32 %v3605_v48  ;;  %v3649_v47 = vmul.f32 %v5883_v2, %v5881_v5  ;;  %v4925_v51 = vpop.f32.mrb[47].mxu1 }
 0x355   :  { %v5887_v6 = vpop.eup %5886  ;;  %v4926_v18 = vadd.f32 %v4925_v51, %v4924_v34 }
 0x356   :  { %v3659_v27 = vpack.c.bf16 %v3649_v47, %v3647_v32  ;;  %4938 = vmatpush3.bf16.msra.mxu0 %v6433_v13  ;;  %v3650_v52 = vmul.f32 %v5887_v6, %v5885_v50  ;;  %v5889_v54 = vpop.eup %5888 }
 0x357   :  { %4939 = vmatprep.subr.bf16.mxu0 %v6439_v14  ;;  %v5891_v44 = vpop.eup %5890 }
 0x358   :  { %3845 = vmatprep.mubr.bf16.mxu0 %v3659_v27  ;;  %v3651_v60 = vmul.f32 %v5891_v44, %v5889_v54  ;;  %v5893_v55 = vpop.eup %5892 }
 0x359   :  { %3846 = vmatmul.mubr.bf16.gmra.mrb[40].mxu0 %v3658_v4  ;;  %v4955_v7 = vpop.f32.mrb[48].mxu1 }
 0x35a   :  { %4940 = vmatpush3.bf16.msra.mxu0 %v6445_v58  ;;  %v4956_v39 = vpop.f32.mrb[49].mxu1 }
 0x35b   :  { %v5895_v63 = vpop.eup %5894  ;;  %4941 = vmatprep.subr.bf16.mxu0 %v6451_v12  ;;  %v4957_v57 = vadd.f32 %v4956_v39, %v4955_v7  ;;  %v4958_v62 = vpop.f32.mrb[50].mxu1 }
 0x35c   :  { %v3652_v56 = vmul.f32 %v5895_v63, %v5893_v55  ;;  %v5897_v13 = vpop.eup %5896  ;;  %v4959_v14 = vpop.f32.mrb[51].mxu1 }
 0x35d   :  { %v6616_v59 = vadd.f32 %v4957_v57, %v4917_v22  ;;  %v4960_v46 = vadd.f32 %v4959_v14, %v4958_v62 }
 0x35e   :  { %v5899_v8 = vpop.eup %5898  ;;  %v3660_v53 = vpack.c.bf16 %v3652_v56, %v3650_v52  ;;  %4942 = vmatpush3.bf16.msra.mxu0 %v6459_v15 }
 0x35f   :  { %v3653_v45 = vmul.f32 %v5899_v8, %v5897_v13  ;;  %v6618_v58 = vadd.f32 %v4960_v46, %v4920_v42 }
 0x361   :  { %v3661_v16 = vpack.c.bf16 %v3653_v45, %v3651_v60  ;;  %v4961_v0 = vpop.f32.mrb[52].mxu1 }
 0x362   :  { %v4962_v12 = vpop.f32.mrb[53].mxu1 }
 0x363   :  { %3853 = vmatprep.mubr.bf16.mxu0 %v3661_v16  ;;  %v4963_v31 = vadd.f32 %v4962_v12, %v4961_v0  ;;  %v4964_v61 = vpop.f32.mrb[54].mxu1 }
 0x364   :  { %3854 = vmatmul.mubr.bf16.gmra.mrb[44].mxu0 %v3660_v53  ;;  %v4965_v1 = vpop.f32.mrb[55].mxu1 }
 0x365   :  { %4215 = vmatprep.mubr.bf16.mxu0 %v6228_v40  ;;  %v6621_v23 = vadd.f32 %v4963_v31, %v4923_v33  ;;  %v4966_v15 = vadd.f32 %v4965_v1, %v4964_v61 }
 0x367   :  { %v6623_v28 = vadd.f32 %v4966_v15, %v4926_v18 }
 0x36c   :  { %4216 = vmatmul.mubr.bf16.vlgmr.msra.gmra.mrb[48].mxu0 %v6224_v38  ;;  %v4798_v38 = vld [vmem:[%s6696_s6] ss:$0 sm:$0xff] }
 0x36d   :  { %4223 = vmatprep.mubr.bf16.mxu0 %v6248_v21 }
 0x374   :  { %4224 = vmatmul.mubr.bf16.gmra.mrb[52].mxu0 %v6244_v19 }
 0x414   :  { %v4863_v3 = vpop.f32.mrb[32].mxu0 }
 0x415   :  { %v4864_v29 = vpop.f32.mrb[33].mxu0 }
 0x416   :  { %v4865_v22 = vadd.f32 %v4864_v29, %v4863_v3  ;;  %v4866_v35 = vpop.f32.mrb[34].mxu0 }
 0x417   :  { %v4867_v36 = vpop.f32.mrb[35].mxu0 }
 0x418   :  { %v4868_v40 = vadd.f32 %v4867_v36, %v4866_v35  ;;  %v6631_v25 = vadd.f32 %v4865_v22, %v4798_v38 }
 0x41a   :  { %v3835_v48 = vadd.f32 %v4868_v40, %v4798_v38  ;;  %v4249_v10 = vsel %vm4248_vm0, %v6631_v25, -inf }
 0x41c   :  { %v4250_v6 = vsel %vm4248_vm0, %v3835_v48, -inf }
 0x41e   :  { %v4869_v37 = vpop.f32.mrb[36].mxu0 }
 0x41f   :  { %v4870_v32 = vpop.f32.mrb[37].mxu0 }
 0x420   :  { %v4871_v26 = vadd.f32 %v4870_v32, %v4869_v37  ;;  %v4872_v41 = vpop.f32.mrb[38].mxu0 }
 0x421   :  { %v4873_v20 = vpop.f32.mrb[39].mxu0 }
 0x422   :  { %v4874_v42 = vadd.f32 %v4873_v20, %v4872_v41  ;;  %v3840_v54 = vadd.f32 %v4871_v26, %v4798_v38 }
 0x424   :  { %v3843_v55 = vadd.f32 %v4874_v42, %v4798_v38  ;;  %v4251_v56 = vsel %vm4248_vm0, %v3840_v54, -inf }
 0x426   :  { %v4252_v62 = vsel %vm4248_vm0, %v3843_v55, -inf }
 0x42c   :  { %v4875_v9 = vpop.f32.mrb[40].mxu0 }
 0x42d   :  { %v4876_v21 = vpop.f32.mrb[41].mxu0 }
 0x42e   :  { %v4877_v19 = vadd.f32 %v4876_v21, %v4875_v9  ;;  %v4878_v43 = vpop.f32.mrb[42].mxu0 }
 0x42f   :  { %v4879_v5 = vpop.f32.mrb[43].mxu0 }
 0x430   :  { %v6633_v2 = vadd.f32 %v4877_v19, %v4798_v38  ;;  %v4880_v4 = vadd.f32 %v4879_v5, %v4878_v43 }
 0x432   :  { %v4253_v50 = vsel %vm4248_vm0, %v6633_v2, -inf  ;;  %v6639_v47 = vadd.f32 %v4880_v4, %v4798_v38 }
 0x433   :  { %v4254_v30 = vmax.f32 %v4249_v10, %v4253_v50 }
 0x434   :  { %v4255_v33 = vsel %vm4248_vm0, %v6639_v47, -inf }
 0x435   :  { %v4256_v34 = vmax.f32 %v4250_v6, %v4255_v33 }
 0x437   :  { %v4261_v27 = vmax.f32 %v4254_v30, %v4256_v34  ;;  %v4881_v51 = vpop.f32.mrb[44].mxu0 }
 0x438   :  { %v4882_v52 = vpop.f32.mrb[45].mxu0 }
 0x439   :  { %v4883_v18 = vadd.f32 %v4882_v52, %v4881_v51  ;;  %v4884_v44 = vpop.f32.mrb[46].mxu0 }
 0x43a   :  { %v4885_v60 = vpop.f32.mrb[47].mxu0 }
 0x43b   :  { %v3856_v63 = vadd.f32 %v4883_v18, %v4798_v38  ;;  %v4886_v7 = vadd.f32 %v4885_v60, %v4884_v44 }
 0x43d   :  { %v4257_v39 = vsel %vm4248_vm0, %v3856_v63, -inf  ;;  %v3859_v13 = vadd.f32 %v4886_v7, %v4798_v38 }
 0x43e   :  { %v4258_v57 = vmax.f32 %v4251_v56, %v4257_v39 }
 0x43f   :  { %v4259_v8 = vsel %vm4248_vm0, %v3859_v13, -inf  ;;  %v4943_v53 = vpop.f32.mrb[48].mxu0 }
 0x440   :  { %v4260_v14 = vmax.f32 %v4252_v62, %v4259_v8  ;;  %v4944_v45 = vpop.f32.mrb[49].mxu0 }
 0x441   :  { %v4945_v46 = vadd.f32 %v4944_v45, %v4943_v53  ;;  %v4946_v16 = vpop.f32.mrb[50].mxu0 }
 0x442   :  { %v4262_v0 = vmax.f32 %v4258_v57, %v4260_v14  ;;  %v4947_v12 = vpop.f32.mrb[51].mxu0 }
 0x443   :  { %v4218_v31 = vadd.f32 %v4945_v46, %v6578_v24  ;;  %v4948_v61 = vadd.f32 %v4947_v12, %v4946_v16 }
 0x444   :  { %v4263_v1 = vmax.f32 %v4261_v27, %v4262_v0 }
 0x445   :  { %v4221_v15 = vadd.f32 %v4948_v61, %v6583_v11 }
 0x446   :  { %v4264_v3 = vrot.slane %v4263_v1, 4 }
 0x447   :  { %v4949_v29 = vpop.f32.mrb[52].mxu0 }
 0x448   :  { %v4265_v22 = vmax.f32 %v4263_v1, %v4264_v3  ;;  %v4950_v35 = vpop.f32.mrb[53].mxu0 }
 0x449   :  { %v4951_v36 = vadd.f32 %v4950_v35, %v4949_v29  ;;  %v4952_v40 = vpop.f32.mrb[54].mxu0 }
 0x44a   :  { %v4266_v37 = vrot.slane %v4265_v22, 2  ;;  %v4953_v32 = vpop.f32.mrb[55].mxu0 }
 0x44b   :  { %v4226_v26 = vadd.f32 %v4951_v36, %v6591_v17  ;;  %v4954_v41 = vadd.f32 %v4953_v32, %v4952_v40 }
 0x44c   :  { %v4267_v20 = vmax.f32 %v4265_v22, %v4266_v37 }
 0x44d   :  { %v4229_v42 = vadd.f32 %v4954_v41, %v6596_v49 }
 0x44e   :  { %v4268_v38 = vrot.slane %v4267_v20, 1 }
 0x450   :  { %v4269_v24 = vmax.f32 %v4267_v20, %v4268_v38 }
 0x452   :  { %v4277_v9 = vsub.f32 %v3859_v13, %v4269_v24  ;;  %v4270_v21 = vsub.f32 %v6631_v25, %v4269_v24  ;;  %v4271_v11 = vsub.f32 %v3835_v48, %v4269_v24  ;;  %v4272_v19 = vsub.f32 %v3840_v54, %v4269_v24 }
 0x453   :  { %v4273_v43 = vsub.f32 %v3843_v55, %v4269_v24  ;;  %v4274_v5 = vsub.f32 %v6633_v2, %v4269_v24  ;;  %v4275_v4 = vsub.f32 %v6639_v47, %v4269_v24  ;;  %v4276_v10 = vsub.f32 %v3856_v63, %v4269_v24 }
 0x454   :  { %v4292_v50 = vmul.f32 1.442695, %v4277_v9  ;;  %v4278_v30 = vmul.f32 1.442695, %v4270_v21  ;;  %v4280_v17 = vmul.f32 1.442695, %v4271_v11 }
 0x455   :  { %v4282_v6 = vmul.f32 1.442695, %v4272_v19  ;;  %v4284_v33 = vmul.f32 1.442695, %v4273_v43  ;;  %v4286_v49 = vmul.f32 1.442695, %v4274_v5 }
 0x456   :  { %5900 = vpow2.f32 %v4292_v50  ;;  %v4288_v34 = vmul.f32 1.442695, %v4275_v4  ;;  %v4290_v25 = vmul.f32 1.442695, %v4276_v10 }
 0x457   :  { %5902 = vpow2.f32 %v4278_v30 }
 0x458   :  { %5904 = vpow2.f32 %v4280_v17 }
 0x459   :  { %5906 = vpow2.f32 %v4282_v6  ;;  %v4346_v6 = vld [vmem:[%s6698_s8] sm:$0x1] }
 0x45a   :  { %5908 = vpow2.f32 %v4284_v33 }
 0x45b   :  { %5910 = vpow2.f32 %v4286_v49 }
 0x45c   :  { %5912 = vpow2.f32 %v4288_v34 }
 0x45d   :  { %5914 = vpow2.f32 %v4290_v25 }
 0x460   :  { %v5901_v48 = vpop.eup %5900 }
 0x461   :  { %v5903_v2 = vpop.eup %5902  ;;  %v4301_v47 = vmul.f32 %v5901_v48, %v6623_v28 }
 0x462   :  { %v5905_v27 = vpop.eup %5904  ;;  %v4294_v51 = vmul.f32 %v5903_v2, %v4218_v31  ;;  %v4323_v52 = vsel %vm4248_vm0, %v5903_v2, 0.0 }
 0x463   :  { %v5907_v54 = vpop.eup %5906  ;;  %v4295_v18 = vmul.f32 %v5905_v27, %v4221_v15  ;;  %v4324_v44 = vsel %vm4248_vm0, %v5905_v27, 0.0  ;;  %v4315_v20 = vsel %vm4248_vm0, %v4301_v47, 0.0 }
 0x464   :  { %v5909_v60 = vpop.eup %5908  ;;  %v4302_v55 = vsel %vm4248_vm0, %v4294_v51, 0.0  ;;  %v4325_v63 = vadd.f32 %v4324_v44, %v4323_v52  ;;  %v4296_v7 = vmul.f32 %v5907_v54, %v4226_v26  ;;  %v4326_v13 = vsel %vm4248_vm0, %v5907_v54, 0.0 }
 0x465   :  { %v5911_v56 = vpop.eup %5910  ;;  %v4303_v39 = vsel %vm4248_vm0, %v4295_v18, 0.0  ;;  %v4297_v57 = vmul.f32 %v5909_v60, %v4229_v42  ;;  %v4328_v16 = vsel %vm4248_vm0, %v5909_v60, 0.0 }
 0x466   :  { %v5913_v28 = vpop.eup %5912  ;;  %v4304_v62 = vadd.f32 %v4303_v39, %v4302_v55  ;;  %v4327_v8 = vadd.f32 %v4326_v13, %v4325_v63  ;;  %v4298_v53 = vmul.f32 %v5911_v56, %v6616_v59  ;;  %v4305_v45 = vsel %vm4248_vm0, %v4296_v7, 0.0 }
 0x467   :  { %v5915_v14 = vpop.eup %5914  ;;  %v4299_v46 = vmul.f32 %v5913_v28, %v6618_v58  ;;  %v4307_v61 = vsel %vm4248_vm0, %v4297_v57, 0.0  ;;  %v4330_v1 = vsel %vm4248_vm0, %v5911_v56, 0.0  ;;  %v4332_v59 = vsel %vm4248_vm0, %v5913_v28, 0.0 }
 0x468   :  { %v4306_v0 = vadd.f32 %v4305_v45, %v4304_v62  ;;  %v4300_v12 = vmul.f32 %v5915_v14, %v6621_v23  ;;  %v4329_v31 = vadd.f32 %v4328_v16, %v4327_v8  ;;  %v4309_v29 = vsel %vm4248_vm0, %v4298_v53, 0.0 }
 0x469   :  { %v4311_v58 = vsel %vm4248_vm0, %v4299_v46, 0.0  ;;  %v4334_v36 = vsel %vm4248_vm0, %v5915_v14, 0.0  ;;  %v4336_v23 = vsel %vm4248_vm0, %v5901_v48, 0.0 }
 0x46a   :  { %v4308_v15 = vadd.f32 %v4307_v61, %v4306_v0  ;;  %v4331_v3 = vadd.f32 %v4330_v1, %v4329_v31  ;;  %v4313_v32 = vsel %vm4248_vm0, %v4300_v12, 0.0 }
 0x46c   :  { %v4310_v22 = vadd.f32 %v4309_v29, %v4308_v15  ;;  %v4333_v35 = vadd.f32 %v4332_v59, %v4331_v3 }
 0x46e   :  { %v4312_v40 = vadd.f32 %v4311_v58, %v4310_v22  ;;  %v4335_v37 = vadd.f32 %v4334_v36, %v4333_v35 }
 0x470   :  { %v4314_v26 = vadd.f32 %v4313_v32, %v4312_v40  ;;  %v4337_v41 = vadd.f32 %v4336_v23, %v4335_v37 }
 0x472   :  { %v4316_v42 = vadd.f32 %v4315_v20, %v4314_v26  ;;  %v4338_v38 = vrot.slane %v4337_v41, 4 }
 0x474   :  { %v4317_v24 = vrot.slane %v4316_v42, 4  ;;  %v4339_v9 = vadd.f32 %v4338_v38, %v4337_v41 }
 0x476   :  { %v4340_v21 = vrot.slane %v4339_v9, 2  ;;  %v4318_v11 = vadd.f32 %v4317_v24, %v4316_v42 }
 0x478   :  { %v4341_v19 = vadd.f32 %v4340_v21, %v4339_v9  ;;  %v4319_v5 = vrot.slane %v4318_v11, 2 }
 0x47a   :  { %v4342_v43 = vrot.slane %v4341_v19, 1  ;;  %v4320_v10 = vadd.f32 %v4319_v5, %v4318_v11 }
 0x47c   :  { %v4343_v4 = vadd.f32 %v4342_v43, %v4341_v19  ;;  %v4321_v50 = vrot.slane %v4320_v10, 1 }
 0x47e   :  { %5916 = vrcp.f32 %v4343_v4  ;;  %v4322_v30 = vadd.f32 %v4321_v50, %v4320_v10 }
 0x488   :  { %v5917_v17 = vpop.eup %5916 }
 0x489   :  { %v4345_v33 = vmul.f32 %v5917_v17, %v4322_v30 }
 0x48b   :  { %v4347_v49 = vadd.f32 %v4346_v6, %v4345_v33 }
 0x48d   :  { %4349 = vst.msk [vmem:[#allocation7] sm:$0x1] %vm4348_vm1, %v4347_v49 }
 0x48e   :  { %5973 = shalt.err (!%p5970_p6)
}
 0x48f   :  { %s5974_s1 = scalar_lea.hbm %s6699_s9, 16 }
 0x490   :  { %p5975_p7 = scmp.ne.s32.totalorder %s6699_s9, %s5974_s1  ;;  %p5978_p8 = scmp.lt.u32.totalorder %s5974_s1, %s6699_s9 }
 0x492   :  { %p5980_p9 = pnand %p5978_p8, %p5975_p7 }
 0x494   :  { %5983 = shalt.err (!%p5980_p9)
}
 0x495   :  { %4359 = dma.vmem_to_hbm [thread:$0]  %s4357_s0, 16, %s6699_s9, [#allocation4]  }
 0x496   :  { %5988 = dma.done.wait [#allocation4], 16  }
 0x497   :  { %5989 = vsyncadd [#allocation4], 4294967280 }
 0x498   :  { %4363 = vsyncpa [#allocation3], 1 }
 0x499   :  { %4364 = vsyncpa [#allocation6], 1 }
 0x49a   :  { %4365 = vsyncpa [#allocation4], 1 }

</bundles_post_ra>
